<compile_context>
chip_gen: v7x
topology: tpu7x:2x2x1
jax: 0.10.0
libtpu: 0.0.40
codegen_flags: <defaults>
</compile_context>

<pallas_src>
import functools

import jax
import jax.numpy as jnp
import numpy as np
from jax.experimental import pallas as pl
from jax.experimental.pallas import tpu as pltpu

LANE = 128  # pad feature dims to full lane width (lane-dense vregs / stores)


# ----------------------------- fused Pallas kernel -----------------------------

def fused_rgcn_kernel(x_ref, a_ref, w1_ref, b1_ref, wrel_ref, root_ref, cb_ref,
                      w2_ref, b2_ref, wo_ref, bo_ref, o_ref, *, num_relations):
    # linear1  (+ dropout == identity in inference)
    h = jnp.dot(x_ref[...], w1_ref[...], preferred_element_type=jnp.float32) + b1_ref[...]

    def conv_bn_relu(h):
        # Packed relation contraction: sum_r A_r @ (h @ W_r)
        #   xw_stack[r*N + m, :] = (h @ W_r)[m, :]
        #   a_ref[n, r*N + m]    = #edges of relation r from node m to node n
        xw_stack = jnp.concatenate(
            [jnp.dot(h, wrel_ref[r], preferred_element_type=jnp.float32)
             for r in range(num_relations)],
            axis=0)                                                               # (R*N, HP)
        rel = jnp.dot(a_ref[...], xw_stack, preferred_element_type=jnp.float32)   # (N, HP)
        out = (rel
               + jnp.dot(h, root_ref[...], preferred_element_type=jnp.float32)
               + cb_ref[...])
        # BatchNorm already folded into wrel/root/cb at prep time; only ReLU remains.
        return jnp.maximum(out, 0.0)

    h = conv_bn_relu(h)   # conv1 + bn + relu (+ dropout identity)
    h = conv_bn_relu(h)   # conv2 + bn + relu (+ dropout identity)

    # linear2 -> linearO -> sigmoid (lane-dense padded output slab; logit lives in column 0)
    h = jnp.dot(h, w2_ref[...], preferred_element_type=jnp.float32) + b2_ref[...]
    z = jnp.dot(h, wo_ref[...], preferred_element_type=jnp.float32) + bo_ref[...]
    o_ref[...] = jax.nn.sigmoid(z).astype(o_ref.dtype)


# ----------------------------- wrapper -----------------------------

def _pad_to(a, shape):
    return jnp.pad(a, [(0, t - s) for s, t in zip(a.shape, shape)])


def rgcn_model_forward(x, edge_index, edge_type, params, num_relations):
    N, F = x.shape
    H = params["w1"].shape[1]
    R = num_relations
    FP = max(LANE, F)
    HP = max(LANE, H)
    OP = LANE            # lane-dense output slab width
    eps = 1e-5

    # ---- one-time parameter prep (plain-JAX glue) ----
    # Fold inference BatchNorm (per-channel affine) into the conv weights / bias.
    s = params["bn_g"] * jax.lax.rsqrt(params["bn_v"] + eps)      # (1, H)
    t = params["bn_b"] - params["bn_m"] * s                       # (1, H)
    wrel_f = params["Wrel"] * s[None]                             # scale output columns
    root_f = params["root"] * s
    cb_f = params["conv_b"] * s + t

    # Lane-pad everything to 128.
    x_p = _pad_to(x, (N, FP))
    w1_p = _pad_to(params["w1"], (FP, HP))
    b1_p = _pad_to(params["b1"], (1, HP))
    wrel_p = _pad_to(wrel_f, (R, HP, HP))
    root_p = _pad_to(root_f, (HP, HP))
    cb_p = _pad_to(cb_f, (1, HP))
    w2_p = _pad_to(params["w2"], (HP, HP))
    b2_p = _pad_to(params["b2"], (1, HP))
    wo_p = _pad_to(params["wO"], (HP, OP))
    bo_p = _pad_to(params["bO"], (1, OP))

    # Packed adjacency: A_packed[n, r*N + m] = #edges of relation r from node m to node n.
    # TODO(synk): for large graphs, pass edge_index/edge_type via PrefetchScalarGridSpec and
    # gather/accumulate rows in-kernel instead of materializing this dense (N, R*N) slab.
    src, dst = edge_index[0], edge_index[1]
    a_packed = jnp.zeros((N, R * N), jnp.float32).at[dst, edge_type * N + src].add(1.0)

    out_p = pl.pallas_call(
        functools.partial(fused_rgcn_kernel, num_relations=R),
        out_shape=jax.ShapeDtypeStruct((N, OP), jnp.float32),
        grid=(1,),
        in_specs=[
            pl.BlockSpec((N, FP), lambda i: (0, 0)),          # x
            pl.BlockSpec((N, R * N), lambda i: (0, 0)),       # packed adjacency
            pl.BlockSpec((FP, HP), lambda i: (0, 0)),         # w1
            pl.BlockSpec((1, HP), lambda i: (0, 0)),          # b1
            pl.BlockSpec((R, HP, HP), lambda i: (0, 0, 0)),   # Wrel (BN-folded)
            pl.BlockSpec((HP, HP), lambda i: (0, 0)),         # root (BN-folded)
            pl.BlockSpec((1, HP), lambda i: (0, 0)),          # conv bias (BN-folded)
            pl.BlockSpec((HP, HP), lambda i: (0, 0)),         # w2
            pl.BlockSpec((1, HP), lambda i: (0, 0)),          # b2
            pl.BlockSpec((HP, OP), lambda i: (0, 0)),         # wO (padded to lane-dense)
            pl.BlockSpec((1, OP), lambda i: (0, 0)),          # bO
        ],
        out_specs=pl.BlockSpec((N, OP), lambda i: (0, 0)),
    )(x_p, a_packed, w1_p, b1_p, wrel_p, root_p, cb_p, w2_p, b2_p, wo_p, bo_p)

    return out_p[:, :1]


# ----------------------------- pure-JAX reference -----------------------------

def reference_forward(x, edge_index, edge_type, params, num_relations):
    N = x.shape[0]
    eps = 1e-5
    src, dst = edge_index[0], edge_index[1]
    A = jnp.zeros((num_relations, N, N), jnp.float32).at[edge_type, dst, src].add(1.0)

    def conv(h):
        rel = jnp.einsum("rnm,mh,rhk->nk", A, h, params["Wrel"])
        return rel + h @ params["root"] + params["conv_b"][0]

    def bn_relu(h):
        y = (h - params["bn_m"][0]) * jax.lax.rsqrt(params["bn_v"][0] + eps) \
            * params["bn_g"][0] + params["bn_b"][0]
        return jnp.maximum(y, 0.0)

    h = x @ params["w1"] + params["b1"][0]
    h = bn_relu(conv(h))
    h = bn_relu(conv(h))
    h = h @ params["w2"] + params["b2"][0]
    z = h @ params["wO"] + params["bO"][0]
    return jax.nn.sigmoid(z)


# ----------------------------- main -----------------------------

if __name__ == "__main__":
    N, F, H, R, E = 64, 16, 32, 3, 200   # nodes, num_features, hidden_channels, num_relations, edges

    key = jax.random.PRNGKey(0)
    keys = jax.random.split(key, 16)

    def glorot(k, shape):
        fan_in, fan_out = shape[-2], shape[-1]
        lim = (6.0 / (fan_in + fan_out)) ** 0.5
        return jax.random.uniform(k, shape, jnp.float32, -lim, lim)

    params = {
        # linear1: num_features -> hidden
        "w1": glorot(keys[0], (F, H)),
        "b1": jax.random.normal(keys[1], (1, H), jnp.float32) * 0.1,
        # RGCNConv (single module, applied twice — matches the PyTorch spec)
        "Wrel": glorot(keys[2], (R, H, H)),
        "root": glorot(keys[3], (H, H)),
        "conv_b": jnp.zeros((1, H), jnp.float32),
        # BatchNorm (single module, inference running stats, applied twice)
        "bn_g": 1.0 + 0.1 * jax.random.normal(keys[4], (1, H), jnp.float32),
        "bn_b": 0.1 * jax.random.normal(keys[5], (1, H), jnp.float32),
        "bn_m": 0.1 * jax.random.normal(keys[6], (1, H), jnp.float32),
        "bn_v": 1.0 + 0.1 * jax.random.uniform(keys[7], (1, H), jnp.float32),
        # linear2: hidden -> hidden
        "w2": glorot(keys[8], (H, H)),
        "b2": jax.random.normal(keys[9], (1, H), jnp.float32) * 0.1,
        # linearO: hidden -> 1
        "wO": glorot(keys[10], (H, 1)),
        "bO": jax.random.normal(keys[11], (1, 1), jnp.float32) * 0.1,
    }

    x = jax.random.normal(keys[12], (N, F), jnp.float32)
    edge_index = jax.random.randint(keys[13], (2, E), 0, N, jnp.int32)
    edge_type = jax.random.randint(keys[14], (E,), 0, R, jnp.int32)

    out = jax.block_until_ready(rgcn_model_forward(x, edge_index, edge_type, params, R))
    ref = jax.block_until_ready(reference_forward(x, edge_index, edge_type, params, R))

    assert out.shape == (N, 1)
    # Slightly relaxed vs f32 exact: BN folding + packed K=R*N contraction reorder the f32 sums.
    np.testing.assert_allclose(np.asarray(out), np.asarray(ref), rtol=1e-3, atol=1e-5)
    print("KERNEL_OK")
</pallas_src>

<mosaic_0001>
module attributes {stable_mosaic.version = 11 : i64} {
  func.func @fused_rgcn_kernel(%arg0: i32, %arg1: memref<64x128xf32, #tpu.memory_space<vmem>>, %arg2: memref<64x192xf32, #tpu.memory_space<vmem>>, %arg3: memref<128x128xf32, #tpu.memory_space<vmem>>, %arg4: memref<1x128xf32, #tpu.memory_space<vmem>>, %arg5: memref<3x128x128xf32, #tpu.memory_space<vmem>>, %arg6: memref<128x128xf32, #tpu.memory_space<vmem>>, %arg7: memref<1x128xf32, #tpu.memory_space<vmem>>, %arg8: memref<128x128xf32, #tpu.memory_space<vmem>>, %arg9: memref<1x128xf32, #tpu.memory_space<vmem>>, %arg10: memref<128x128xf32, #tpu.memory_space<vmem>>, %arg11: memref<1x128xf32, #tpu.memory_space<vmem>>, %arg12: memref<64x128xf32, #tpu.memory_space<vmem>>) attributes {dimension_semantics = [#tpu.dimension_semantics<arbitrary>], iteration_bounds = array<i64: 1>, scalar_prefetch = 0 : i64, scratch_operands = 0 : i64, tpu.core_type = #tpu.core_type<tc>, window_params = [{pipeline_mode = #tpu.pipeline_mode<synchronous>, transform_indices = @transform_0, window_bounds = array<i64: 64, 128>}, {pipeline_mode = #tpu.pipeline_mode<synchronous>, transform_indices = @transform_1, window_bounds = array<i64: 64, 192>}, {pipeline_mode = #tpu.pipeline_mode<synchronous>, transform_indices = @transform_2, window_bounds = array<i64: 128, 128>}, {pipeline_mode = #tpu.pipeline_mode<synchronous>, transform_indices = @transform_3, window_bounds = array<i64: 1, 128>}, {pipeline_mode = #tpu.pipeline_mode<synchronous>, transform_indices = @transform_4, window_bounds = array<i64: 3, 128, 128>}, {pipeline_mode = #tpu.pipeline_mode<synchronous>, transform_indices = @transform_5, window_bounds = array<i64: 128, 128>}, {pipeline_mode = #tpu.pipeline_mode<synchronous>, transform_indices = @transform_6, window_bounds = array<i64: 1, 128>}, {pipeline_mode = #tpu.pipeline_mode<synchronous>, transform_indices = @transform_7, window_bounds = array<i64: 128, 128>}, {pipeline_mode = #tpu.pipeline_mode<synchronous>, transform_indices = @transform_8, window_bounds = array<i64: 1, 128>}, {pipeline_mode = #tpu.pipeline_mode<synchronous>, transform_indices = @transform_9, window_bounds = array<i64: 128, 128>}, {pipeline_mode = #tpu.pipeline_mode<synchronous>, transform_indices = @transform_10, window_bounds = array<i64: 1, 128>}, {pipeline_mode = #tpu.pipeline_mode<synchronous>, transform_indices = @transform_11, window_bounds = array<i64: 64, 128>}]} {
    %c0 = arith.constant 0 : index
    %c0_0 = arith.constant 0 : index
    %0 = vector.load %arg1[%c0, %c0_0] : memref<64x128xf32, #tpu.memory_space<vmem>>, vector<64x128xf32>
    %c0_1 = arith.constant 0 : index
    %c0_2 = arith.constant 0 : index
    %1 = vector.load %arg3[%c0_1, %c0_2] : memref<128x128xf32, #tpu.memory_space<vmem>>, vector<128x128xf32>
    %cst = arith.constant dense<0.000000e+00> : vector<64x128xf32>
    %2 = tpu.matmul %0, %1, %cst {dimension_numbers = #tpu.dot_dimension_numbers<[1], [0], [0], [1], [0, 0, 1, 1], [], []>} : vector<64x128xf32>, vector<128x128xf32>, vector<64x128xf32> -> vector<64x128xf32>
    %c0_3 = arith.constant 0 : index
    %c0_4 = arith.constant 0 : index
    %3 = vector.load %arg4[%c0_3, %c0_4] : memref<1x128xf32, #tpu.memory_space<vmem>>, vector<1x128xf32>
    %4 = vector.broadcast %3 : vector<1x128xf32> to vector<64x128xf32>
    %5 = arith.addf %2, %4 : vector<64x128xf32>
    %c0_5 = arith.constant 0 : index
    %c0_6 = arith.constant 0 : index
    %c0_7 = arith.constant 0 : index
    %6 = vector.load %arg5[%c0_5, %c0_6, %c0_7] : memref<3x128x128xf32, #tpu.memory_space<vmem>>, vector<1x128x128xf32>
    %7 = vector.shape_cast %6 : vector<1x128x128xf32> to vector<128x128xf32>
    %cst_8 = arith.constant dense<0.000000e+00> : vector<64x128xf32>
    %8 = tpu.matmul %5, %7, %cst_8 {dimension_numbers = #tpu.dot_dimension_numbers<[1], [0], [0], [1], [0, 0, 1, 1], [], []>} : vector<64x128xf32>, vector<128x128xf32>, vector<64x128xf32> -> vector<64x128xf32>
    %c1 = arith.constant 1 : index
    %c0_9 = arith.constant 0 : index
    %c0_10 = arith.constant 0 : index
    %9 = vector.load %arg5[%c1, %c0_9, %c0_10] : memref<3x128x128xf32, #tpu.memory_space<vmem>>, vector<1x128x128xf32>
    %10 = vector.shape_cast %9 : vector<1x128x128xf32> to vector<128x128xf32>
    %cst_11 = arith.constant dense<0.000000e+00> : vector<64x128xf32>
    %11 = tpu.matmul %5, %10, %cst_11 {dimension_numbers = #tpu.dot_dimension_numbers<[1], [0], [0], [1], [0, 0, 1, 1], [], []>} : vector<64x128xf32>, vector<128x128xf32>, vector<64x128xf32> -> vector<64x128xf32>
    %c2 = arith.constant 2 : index
    %c0_12 = arith.constant 0 : index
    %c0_13 = arith.constant 0 : index
    %12 = vector.load %arg5[%c2, %c0_12, %c0_13] : memref<3x128x128xf32, #tpu.memory_space<vmem>>, vector<1x128x128xf32>
    %13 = vector.shape_cast %12 : vector<1x128x128xf32> to vector<128x128xf32>
    %cst_14 = arith.constant dense<0.000000e+00> : vector<64x128xf32>
    %14 = tpu.matmul %5, %13, %cst_14 {dimension_numbers = #tpu.dot_dimension_numbers<[1], [0], [0], [1], [0, 0, 1, 1], [], []>} : vector<64x128xf32>, vector<128x128xf32>, vector<64x128xf32> -> vector<64x128xf32>
    %15 = tpu.concatenate %8, %11, %14 in 0 : vector<64x128xf32>, vector<64x128xf32>, vector<64x128xf32> -> vector<192x128xf32>
    %c0_15 = arith.constant 0 : index
    %c0_16 = arith.constant 0 : index
    %16 = vector.load %arg2[%c0_15, %c0_16] : memref<64x192xf32, #tpu.memory_space<vmem>>, vector<64x192xf32>
    %cst_17 = arith.constant dense<0.000000e+00> : vector<64x128xf32>
    %17 = tpu.matmul %16, %15, %cst_17 {dimension_numbers = #tpu.dot_dimension_numbers<[1], [0], [0], [1], [0, 0, 1, 1], [], []>} : vector<64x192xf32>, vector<192x128xf32>, vector<64x128xf32> -> vector<64x128xf32>
    %c0_18 = arith.constant 0 : index
    %c0_19 = arith.constant 0 : index
    %18 = vector.load %arg6[%c0_18, %c0_19] : memref<128x128xf32, #tpu.memory_space<vmem>>, vector<128x128xf32>
    %cst_20 = arith.constant dense<0.000000e+00> : vector<64x128xf32>
    %19 = tpu.matmul %5, %18, %cst_20 {dimension_numbers = #tpu.dot_dimension_numbers<[1], [0], [0], [1], [0, 0, 1, 1], [], []>} : vector<64x128xf32>, vector<128x128xf32>, vector<64x128xf32> -> vector<64x128xf32>
    %20 = arith.addf %17, %19 : vector<64x128xf32>
    %c0_21 = arith.constant 0 : index
    %c0_22 = arith.constant 0 : index
    %21 = vector.load %arg7[%c0_21, %c0_22] : memref<1x128xf32, #tpu.memory_space<vmem>>, vector<1x128xf32>
    %22 = vector.broadcast %21 : vector<1x128xf32> to vector<64x128xf32>
    %23 = arith.addf %20, %22 : vector<64x128xf32>
    %cst_23 = arith.constant 0.000000e+00 : f32
    %24 = vector.broadcast %cst_23 : f32 to vector<64x128xf32>
    %25 = arith.maximumf %23, %24 : vector<64x128xf32>
    %c0_24 = arith.constant 0 : index
    %c0_25 = arith.constant 0 : index
    %c0_26 = arith.constant 0 : index
    %26 = vector.load %arg5[%c0_24, %c0_25, %c0_26] : memref<3x128x128xf32, #tpu.memory_space<vmem>>, vector<1x128x128xf32>
    %27 = vector.shape_cast %26 : vector<1x128x128xf32> to vector<128x128xf32>
    %cst_27 = arith.constant dense<0.000000e+00> : vector<64x128xf32>
    %28 = tpu.matmul %25, %27, %cst_27 {dimension_numbers = #tpu.dot_dimension_numbers<[1], [0], [0], [1], [0, 0, 1, 1], [], []>} : vector<64x128xf32>, vector<128x128xf32>, vector<64x128xf32> -> vector<64x128xf32>
    %c1_28 = arith.constant 1 : index
    %c0_29 = arith.constant 0 : index
    %c0_30 = arith.constant 0 : index
    %29 = vector.load %arg5[%c1_28, %c0_29, %c0_30] : memref<3x128x128xf32, #tpu.memory_space<vmem>>, vector<1x128x128xf32>
    %30 = vector.shape_cast %29 : vector<1x128x128xf32> to vector<128x128xf32>
    %cst_31 = arith.constant dense<0.000000e+00> : vector<64x128xf32>
    %31 = tpu.matmul %25, %30, %cst_31 {dimension_numbers = #tpu.dot_dimension_numbers<[1], [0], [0], [1], [0, 0, 1, 1], [], []>} : vector<64x128xf32>, vector<128x128xf32>, vector<64x128xf32> -> vector<64x128xf32>
    %c2_32 = arith.constant 2 : index
    %c0_33 = arith.constant 0 : index
    %c0_34 = arith.constant 0 : index
    %32 = vector.load %arg5[%c2_32, %c0_33, %c0_34] : memref<3x128x128xf32, #tpu.memory_space<vmem>>, vector<1x128x128xf32>
    %33 = vector.shape_cast %32 : vector<1x128x128xf32> to vector<128x128xf32>
    %cst_35 = arith.constant dense<0.000000e+00> : vector<64x128xf32>
    %34 = tpu.matmul %25, %33, %cst_35 {dimension_numbers = #tpu.dot_dimension_numbers<[1], [0], [0], [1], [0, 0, 1, 1], [], []>} : vector<64x128xf32>, vector<128x128xf32>, vector<64x128xf32> -> vector<64x128xf32>
    %35 = tpu.concatenate %28, %31, %34 in 0 : vector<64x128xf32>, vector<64x128xf32>, vector<64x128xf32> -> vector<192x128xf32>
    %c0_36 = arith.constant 0 : index
    %c0_37 = arith.constant 0 : index
    %36 = vector.load %arg2[%c0_36, %c0_37] : memref<64x192xf32, #tpu.memory_space<vmem>>, vector<64x192xf32>
    %cst_38 = arith.constant dense<0.000000e+00> : vector<64x128xf32>
    %37 = tpu.matmul %36, %35, %cst_38 {dimension_numbers = #tpu.dot_dimension_numbers<[1], [0], [0], [1], [0, 0, 1, 1], [], []>} : vector<64x192xf32>, vector<192x128xf32>, vector<64x128xf32> -> vector<64x128xf32>
    %c0_39 = arith.constant 0 : index
    %c0_40 = arith.constant 0 : index
    %38 = vector.load %arg6[%c0_39, %c0_40] : memref<128x128xf32, #tpu.memory_space<vmem>>, vector<128x128xf32>
    %cst_41 = arith.constant dense<0.000000e+00> : vector<64x128xf32>
    %39 = tpu.matmul %25, %38, %cst_41 {dimension_numbers = #tpu.dot_dimension_numbers<[1], [0], [0], [1], [0, 0, 1, 1], [], []>} : vector<64x128xf32>, vector<128x128xf32>, vector<64x128xf32> -> vector<64x128xf32>
    %40 = arith.addf %37, %39 : vector<64x128xf32>
    %c0_42 = arith.constant 0 : index
    %c0_43 = arith.constant 0 : index
    %41 = vector.load %arg7[%c0_42, %c0_43] : memref<1x128xf32, #tpu.memory_space<vmem>>, vector<1x128xf32>
    %42 = vector.broadcast %41 : vector<1x128xf32> to vector<64x128xf32>
    %43 = arith.addf %40, %42 : vector<64x128xf32>
    %cst_44 = arith.constant 0.000000e+00 : f32
    %44 = vector.broadcast %cst_44 : f32 to vector<64x128xf32>
    %45 = arith.maximumf %43, %44 : vector<64x128xf32>
    %c0_45 = arith.constant 0 : index
    %c0_46 = arith.constant 0 : index
    %46 = vector.load %arg8[%c0_45, %c0_46] : memref<128x128xf32, #tpu.memory_space<vmem>>, vector<128x128xf32>
    %cst_47 = arith.constant dense<0.000000e+00> : vector<64x128xf32>
    %47 = tpu.matmul %45, %46, %cst_47 {dimension_numbers = #tpu.dot_dimension_numbers<[1], [0], [0], [1], [0, 0, 1, 1], [], []>} : vector<64x128xf32>, vector<128x128xf32>, vector<64x128xf32> -> vector<64x128xf32>
    %c0_48 = arith.constant 0 : index
    %c0_49 = arith.constant 0 : index
    %48 = vector.load %arg9[%c0_48, %c0_49] : memref<1x128xf32, #tpu.memory_space<vmem>>, vector<1x128xf32>
    %49 = vector.broadcast %48 : vector<1x128xf32> to vector<64x128xf32>
    %50 = arith.addf %47, %49 : vector<64x128xf32>
    %c0_50 = arith.constant 0 : index
    %c0_51 = arith.constant 0 : index
    %51 = vector.load %arg10[%c0_50, %c0_51] : memref<128x128xf32, #tpu.memory_space<vmem>>, vector<128x128xf32>
    %cst_52 = arith.constant dense<0.000000e+00> : vector<64x128xf32>
    %52 = tpu.matmul %50, %51, %cst_52 {dimension_numbers = #tpu.dot_dimension_numbers<[1], [0], [0], [1], [0, 0, 1, 1], [], []>} : vector<64x128xf32>, vector<128x128xf32>, vector<64x128xf32> -> vector<64x128xf32>
    %c0_53 = arith.constant 0 : index
    %c0_54 = arith.constant 0 : index
    %53 = vector.load %arg11[%c0_53, %c0_54] : memref<1x128xf32, #tpu.memory_space<vmem>>, vector<1x128xf32>
    %54 = vector.broadcast %53 : vector<1x128xf32> to vector<64x128xf32>
    %55 = arith.addf %52, %54 : vector<64x128xf32>
    %56 = arith.negf %55 : vector<64x128xf32>
    %57 = math.exp %56 : vector<64x128xf32>
    %cst_55 = arith.constant 1.000000e+00 : f32
    %58 = vector.broadcast %cst_55 : f32 to vector<64x128xf32>
    %59 = arith.addf %58, %57 : vector<64x128xf32>
    %60 = arith.divf %58, %59 : vector<64x128xf32>
    %c0_56 = arith.constant 0 : index
    %c0_57 = arith.constant 0 : index
    %61 = vector.load %arg12[%c0_56, %c0_57] : memref<64x128xf32, #tpu.memory_space<vmem>>, vector<64x128xf32>
    tpu.vector_store %arg12[%c0_56, %c0_57], %60 {strides = array<i32>} : memref<64x128xf32, #tpu.memory_space<vmem>>, vector<64x128xf32>,
    return
  }
  func.func @transform_0(%arg0: i32) -> (i32, i32) {
    %c0_i32 = arith.constant 0 : i32
    %c0_i32_0 = arith.constant 0 : i32
    %c0_i32_1 = arith.constant 0 : i32
    return %c0_i32, %c0_i32_0 : i32, i32
  }
  func.func @transform_1(%arg0: i32) -> (i32, i32) {
    %c0_i32 = arith.constant 0 : i32
    %c0_i32_0 = arith.constant 0 : i32
    %c0_i32_1 = arith.constant 0 : i32
    return %c0_i32, %c0_i32_0 : i32, i32
  }
  func.func @transform_2(%arg0: i32) -> (i32, i32) {
    %c0_i32 = arith.constant 0 : i32
    %c0_i32_0 = arith.constant 0 : i32
    %c0_i32_1 = arith.constant 0 : i32
    return %c0_i32, %c0_i32_0 : i32, i32
  }
  func.func @transform_3(%arg0: i32) -> (i32, i32) {
    %c0_i32 = arith.constant 0 : i32
    %c0_i32_0 = arith.constant 0 : i32
    %c0_i32_1 = arith.constant 0 : i32
    return %c0_i32, %c0_i32_0 : i32, i32
  }
  func.func @transform_4(%arg0: i32) -> (i32, i32, i32) {
    %c0_i32 = arith.constant 0 : i32
    %c0_i32_0 = arith.constant 0 : i32
    %c0_i32_1 = arith.constant 0 : i32
    %c0_i32_2 = arith.constant 0 : i32
    return %c0_i32, %c0_i32_0, %c0_i32_1 : i32, i32, i32
  }
  func.func @transform_5(%arg0: i32) -> (i32, i32) {
    %c0_i32 = arith.constant 0 : i32
    %c0_i32_0 = arith.constant 0 : i32
    %c0_i32_1 = arith.constant 0 : i32
    return %c0_i32, %c0_i32_0 : i32, i32
  }
  func.func @transform_6(%arg0: i32) -> (i32, i32) {
    %c0_i32 = arith.constant 0 : i32
    %c0_i32_0 = arith.constant 0 : i32
    %c0_i32_1 = arith.constant 0 : i32
    return %c0_i32, %c0_i32_0 : i32, i32
  }
  func.func @transform_7(%arg0: i32) -> (i32, i32) {
    %c0_i32 = arith.constant 0 : i32
    %c0_i32_0 = arith.constant 0 : i32
    %c0_i32_1 = arith.constant 0 : i32
    return %c0_i32, %c0_i32_0 : i32, i32
  }
  func.func @transform_8(%arg0: i32) -> (i32, i32) {
    %c0_i32 = arith.constant 0 : i32
    %c0_i32_0 = arith.constant 0 : i32
    %c0_i32_1 = arith.constant 0 : i32
    return %c0_i32, %c0_i32_0 : i32, i32
  }
  func.func @transform_9(%arg0: i32) -> (i32, i32) {
    %c0_i32 = arith.constant 0 : i32
    %c0_i32_0 = arith.constant 0 : i32
    %c0_i32_1 = arith.constant 0 : i32
    return %c0_i32, %c0_i32_0 : i32, i32
  }
  func.func @transform_10(%arg0: i32) -> (i32, i32) {
    %c0_i32 = arith.constant 0 : i32
    %c0_i32_0 = arith.constant 0 : i32
    %c0_i32_1 = arith.constant 0 : i32
    return %c0_i32, %c0_i32_0 : i32, i32
  }
  func.func @transform_11(%arg0: i32) -> (i32, i32) {
    %c0_i32 = arith.constant 0 : i32
    %c0_i32_0 = arith.constant 0 : i32
    %c0_i32_1 = arith.constant 0 : i32
    return %c0_i32, %c0_i32_0 : i32, i32
  }
}

</mosaic_0001>

<bundles_post_ra>
// kernel: tpu_custom_call.1
= control target key start
LH: loop header
LB: loop body
LE: loop exit
PB: predicated region body
PF: predicated region fallthrough
CT: control target
= control target key end

     0   :  { %16 = vsyncpa [#allocation3], 0  ;;  %s3887_s0 = inlined_call_operand.hbm [shape: f32[64,128], index: 0, kind: input, shape index: {}]   ;;  %s3888_s1 = inlined_call_operand.hbm [shape: f32[64,192], index: 1, kind: input, shape index: {}]   ;;  %s3889_s2 = inlined_call_operand.hbm [shape: f32[128,128], index: 2, kind: input, shape index: {}]   ;;  %s3890_s3 = inlined_call_operand.vmem [shape: f32[1,128], index: 3, kind: input, shape index: {}]   ;;  %s3891_s4 = inlined_call_operand.hbm [shape: f32[3,128,128], index: 4, kind: input, shape index: {}]   ;;  %s3892_s5 = inlined_call_operand.hbm [shape: f32[128,128], index: 5, kind: input, shape index: {}]   ;;  %s3893_s6 = inlined_call_operand.vmem [shape: f32[1,128], index: 6, kind: input, shape index: {}]   ;;  %s3894_s7 = inlined_call_operand.hbm [shape: f32[128,128], index: 7, kind: input, shape index: {}]   ;;  %s3895_s8 = inlined_call_operand.vmem [shape: f32[1,128], index: 8, kind: input, shape index: {}]   ;;  %s3896_s9 = inlined_call_operand.hbm [shape: f32[128,128], index: 9, kind: input, shape index: {}]   ;;  %s3897_s10 = inlined_call_operand.vmem [shape: f32[1,128], index: 10, kind: input, shape index: {}]   ;;  %s3898_s11 = inlined_call_operand.hbm [shape: f32[64,128], index: 11, kind: output, shape index: {}]  }
   0x1   :  { %17 = vsyncpa [#allocation6], 0 }
   0x2   :  { %18 = vsyncpa [#allocation9], 0 }
   0x3   :  { %19 = vsyncpa [#allocation12], 0 }
   0x4   :  { %20 = vsyncpa [#allocation4], 0  ;;  %s3245_s17 = smov [#allocation5]   ;;  %s3059_s21 = scalar_lea.hbm %s3888_s1, 2048 }
   0x5   :  { %s38_s18 = sshll.u32 %s3245_s17, 4  ;;  %p3060_p0 = scmp.ne.s32.totalorder %s3888_s1, %s3059_s21  ;;  %s39_s18 = int_to_ptr.vmem [resolvable:$true] %s38_s18 }
   0x6   :  { %p3063_p1 = scmp.lt.u32.totalorder %s3059_s21, %s3888_s1 }
   0x8   :  { %p3065_p2 = pnand %p3063_p1, %p3060_p0 }
   0xa   :  { %3068 = shalt.err (!%p3065_p2)
}
   0xb   :  { %s3069_s26 = scalar_lea.vmem %s39_s18, 2048  ;;  %p3074_p4 = scmp.lt.s32.totalorder %s39_s18, %s39_s18 }
   0xc   :  { %p3070_p3 = scmp.ne.s32.totalorder %s39_s18, %s3069_s26  ;;  %p3075_p5 = scmp.lt.s32.totalorder %s3069_s26, %s3069_s26 }
   0xe   :  { %p3076_p6 = por %p3075_p5, %p3074_p4 }
  0x10   :  { %p3077_p7 = pnand %p3076_p6, %p3070_p3 }
  0x12   :  { %3080 = shalt.err (!%p3077_p7)
}
  0x13   :  { %s3246_s27 = smov 256   ;;  %s3247_s28 = smov 16  }
  0x14   :  { %44 = dma.hbm_to_vmem [thread:$0]  %s3888_s1, 2048, %s39_s18, [#allocation6], %s3246_s27, %s3246_s27, %s3247_s28  }
  0x15   :  { %s3248_s12 = smov [#allocation8]   ;;  %s3249_s14 = smov [#allocation11]  }
  0x16   :  { %s64_s13 = sshll.u32 %s3248_s12, 4  ;;  %s90_s15 = sshll.u32 %s3249_s14, 4  ;;  %s65_s13 = int_to_ptr.vmem [resolvable:$true] %s64_s13  ;;  %s91_s15 = int_to_ptr.vmem [resolvable:$true] %s90_s15 }
  0x17   :  { %s3081_s19 = scalar_lea.hbm %s3891_s4, 6144 }
  0x18   :  { %p3082_p8 = scmp.ne.s32.totalorder %s3891_s4, %s3081_s19  ;;  %p3085_p9 = scmp.lt.u32.totalorder %s3081_s19, %s3891_s4 }
  0x1a   :  { %p3087_p10 = pnand %p3085_p9, %p3082_p8 }
  0x1c   :  { %3090 = shalt.err (!%p3087_p10)
}
  0x1d   :  { %s3091_s1 = scalar_lea.vmem %s65_s13, 6144  ;;  %p3096_p12 = scmp.lt.s32.totalorder %s65_s13, %s65_s13 }
  0x1e   :  { %p3092_p11 = scmp.ne.s32.totalorder %s65_s13, %s3091_s1  ;;  %p3097_p13 = scmp.lt.s32.totalorder %s3091_s1, %s3091_s1 }
  0x20   :  { %p3098_p0 = por %p3097_p13, %p3096_p12 }
  0x22   :  { %p3099_p1 = pnand %p3098_p0, %p3092_p11 }
  0x24   :  { %3102 = shalt.err (!%p3099_p1)
}
  0x25   :  { %s3250_s18 = smov 128   ;;  %s3251_s24 = smov 8  }
  0x26   :  { %70 = dma.hbm_to_vmem [thread:$0]  %s3891_s4, 6144, %s65_s13, [#allocation9], %s3250_s18, %s3250_s18, %s3251_s24  }
  0x27   :  { %s3103_s29 = scalar_lea.hbm %s3894_s7, 2048 }
  0x28   :  { %p3104_p2 = scmp.ne.s32.totalorder %s3894_s7, %s3103_s29  ;;  %p3107_p3 = scmp.lt.u32.totalorder %s3103_s29, %s3894_s7 }
  0x2a   :  { %p3109_p4 = pnand %p3107_p3, %p3104_p2 }
  0x2c   :  { %3112 = shalt.err (!%p3109_p4)
}
  0x2d   :  { %s3113_s17 = scalar_lea.vmem %s91_s15, 2048  ;;  %p3118_p6 = scmp.lt.s32.totalorder %s91_s15, %s91_s15 }
  0x2e   :  { %p3114_p5 = scmp.ne.s32.totalorder %s91_s15, %s3113_s17  ;;  %p3119_p7 = scmp.lt.s32.totalorder %s3113_s17, %s3113_s17 }
  0x30   :  { %p3120_p8 = por %p3119_p7, %p3118_p6 }
  0x32   :  { %p3121_p9 = pnand %p3120_p8, %p3114_p5 }
  0x34   :  { %3124 = shalt.err (!%p3121_p9)
}
  0x35   :  { %96 = dma.hbm_to_vmem [thread:$0]  %s3894_s7, 2048, %s91_s15, [#allocation12], %s3250_s18, %s3250_s18, %s3251_s24  }
  0x36   :  { %s3252_s19 = smov [#allocation2]   ;;  %s3253_s21 = smov [#allocation7]  }
  0x37   :  { %s26_s20 = sshll.u32 %s3252_s19, 4  ;;  %s50_s22 = sshll.u32 %s3253_s21, 4  ;;  %s27_s20 = int_to_ptr.vmem [resolvable:$true] %s26_s20  ;;  %s51_s22 = int_to_ptr.vmem [resolvable:$true] %s50_s22 }
  0x38   :  { %s3125_s25 = scalar_lea.hbm %s3887_s0, 1024 }
  0x39   :  { %p3126_p10 = scmp.ne.s32.totalorder %s3887_s0, %s3125_s25  ;;  %p3129_p11 = scmp.lt.u32.totalorder %s3125_s25, %s3887_s0 }
  0x3b   :  { %p3131_p12 = pnand %p3129_p11, %p3126_p10 }
  0x3d   :  { %3134 = shalt.err (!%p3131_p12)
}
  0x3e   :  { %s3135_s7 = scalar_lea.vmem %s27_s20, 1024  ;;  %p3140_p0 = scmp.lt.s32.totalorder %s27_s20, %s27_s20 }
  0x3f   :  { %p3136_p13 = scmp.ne.s32.totalorder %s27_s20, %s3135_s7  ;;  %p3141_p1 = scmp.lt.s32.totalorder %s3135_s7, %s3135_s7 }
  0x41   :  { %p3142_p2 = por %p3141_p1, %p3140_p0 }
  0x43   :  { %p3143_p3 = pnand %p3142_p2, %p3136_p13 }
  0x45   :  { %3146 = shalt.err (!%p3143_p3)
}
  0x46   :  { %32 = dma.hbm_to_vmem [thread:$0]  %s3887_s0, 1024, %s27_s20, [#allocation3], %s3250_s18, %s3250_s18, %s3251_s24  }
  0x47   :  { %s3147_s16 = scalar_lea.hbm %s3889_s2, 2048 }
  0x48   :  { %p3148_p4 = scmp.ne.s32.totalorder %s3889_s2, %s3147_s16  ;;  %p3151_p5 = scmp.lt.u32.totalorder %s3147_s16, %s3889_s2 }
  0x4a   :  { %p3153_p6 = pnand %p3151_p5, %p3148_p4 }
  0x4c   :  { %3156 = shalt.err (!%p3153_p6)
}
  0x4d   :  { %s3157_s21 = scalar_lea.vmem %s51_s22, 2048  ;;  %p3162_p8 = scmp.lt.s32.totalorder %s51_s22, %s51_s22 }
  0x4e   :  { %p3158_p7 = scmp.ne.s32.totalorder %s51_s22, %s3157_s21  ;;  %p3163_p9 = scmp.lt.s32.totalorder %s3157_s21, %s3157_s21 }
  0x50   :  { %p3164_p10 = por %p3163_p9, %p3162_p8 }
  0x52   :  { %p3165_p11 = pnand %p3164_p10, %p3158_p7 }
  0x54   :  { %3168 = shalt.err (!%p3165_p11)
}
  0x55   :  { %56 = dma.hbm_to_vmem [thread:$0]  %s3889_s2, 2048, %s51_s22, [#allocation6], %s3250_s18, %s3250_s18, %s3251_s24  }
  0x56   :  { %s3254_s23 = smov [#allocation10]   ;;  %s3255_s25 = smov [#allocation13]  }
  0x57   :  { %s76_s1 = sshll.u32 %s3254_s23, 4  ;;  %s104_s26 = sshll.u32 %s3255_s25, 4  ;;  %s77_s1 = int_to_ptr.vmem [resolvable:$true] %s76_s1  ;;  %s105_s26 = int_to_ptr.vmem [resolvable:$true] %s104_s26 }
  0x58   :  { %s3169_s29 = scalar_lea.hbm %s3892_s5, 2048 }
  0x59   :  { %p3170_p12 = scmp.ne.s32.totalorder %s3892_s5, %s3169_s29  ;;  %p3173_p13 = scmp.lt.u32.totalorder %s3169_s29, %s3892_s5 }
  0x5b   :  { %p3175_p0 = pnand %p3173_p13, %p3170_p12 }
  0x5d   :  { %3178 = shalt.err (!%p3175_p0)
}
  0x5e   :  { %s3179_s2 = scalar_lea.vmem %s77_s1, 2048  ;;  %p3184_p2 = scmp.lt.s32.totalorder %s77_s1, %s77_s1 }
  0x5f   :  { %p3180_p1 = scmp.ne.s32.totalorder %s77_s1, %s3179_s2  ;;  %p3185_p3 = scmp.lt.s32.totalorder %s3179_s2, %s3179_s2 }
  0x61   :  { %p3186_p4 = por %p3185_p3, %p3184_p2 }
  0x63   :  { %p3187_p5 = pnand %p3186_p4, %p3180_p1 }
  0x65   :  { %3190 = shalt.err (!%p3187_p5)
}
  0x66   :  { %82 = dma.hbm_to_vmem [thread:$0]  %s3892_s5, 2048, %s77_s1, [#allocation9], %s3250_s18, %s3250_s18, %s3251_s24  }
  0x67   :  { %s3191_s4 = scalar_lea.hbm %s3896_s9, 2048 }
  0x68   :  { %p3192_p6 = scmp.ne.s32.totalorder %s3896_s9, %s3191_s4  ;;  %p3195_p7 = scmp.lt.u32.totalorder %s3191_s4, %s3896_s9 }
  0x6a   :  { %p3197_p8 = pnand %p3195_p7, %p3192_p6 }
  0x6c   :  { %3200 = shalt.err (!%p3197_p8)
}
  0x6d   :  { %s3201_s20 = scalar_lea.vmem %s105_s26, 2048  ;;  %p3206_p10 = scmp.lt.s32.totalorder %s105_s26, %s105_s26 }
  0x6e   :  { %p3202_p9 = scmp.ne.s32.totalorder %s105_s26, %s3201_s20  ;;  %p3207_p11 = scmp.lt.s32.totalorder %s3201_s20, %s3201_s20 }
  0x70   :  { %p3208_p12 = por %p3207_p11, %p3206_p10 }
  0x72   :  { %p3209_p13 = pnand %p3208_p12, %p3202_p9 }
  0x74   :  { %3212 = shalt.err (!%p3209_p13)
}
  0x75   :  { %110 = dma.hbm_to_vmem [thread:$0]  %s3896_s9, 2048, %s105_s26, [#allocation12], %s3250_s18, %s3250_s18, %s3251_s24  }
  0x76   :  { %3235 = dma.done.wait [#allocation3], 1024  }
  0x77   :  { %3236 = vsyncadd [#allocation3], 4294966272 }
  0x78   :  { %3237 = dma.done.wait [#allocation6], 4096  }
  0x79   :  { %3238 = vsyncadd [#allocation6], 4294963200 }
  0x7a   :  { %3239 = dma.done.wait [#allocation9], 8192  }
  0x7b   :  { %3240 = vsyncadd [#allocation9], 4294959104 }
  0x7c   :  { %3241 = dma.done.wait [#allocation12], 4096  }
  0x7d   :  { %3242 = vsyncadd [#allocation12], 4294963200  ;;  %v142_v0 = vld [vmem:[#allocation7] sm:$0xff]  ;;  %v143_v1 = vld [vmem:[#allocation7 + $0x8] sm:$0xff]  ;;  %vm772_vm0 = vcmask 523264  }
  0x7e   :  { %v144_v2 = vld [vmem:[#allocation7 + $0x10] sm:$0xff]  ;;  %v2574_v3 = vpack.c.bf16 %v143_v1, %v142_v0  ;;  %v145_v4 = vld [vmem:[#allocation7 + $0x18] sm:$0xff]  ;;  %v146_v6 = vld [vmem:[#allocation7 + $0x20] sm:$0xff] }
  0x7f   :  { %v2578_v5 = vpack.c.bf16 %v145_v4, %v144_v2  ;;  %v147_v7 = vld [vmem:[#allocation7 + $0x28] sm:$0xff]  ;;  %v134_v9 = vld [vmem:[#allocation2] sm:$0xff]  ;;  %v148_v10 = vld [vmem:[#allocation7 + $0x30] sm:$0xff] }
  0x80   :  { %2575 = vmatprep.subr.bf16.mxu0 %v2574_v3  ;;  %v2582_v8 = vpack.c.bf16 %v147_v7, %v146_v6  ;;  %v149_v11 = vld [vmem:[#allocation7 + $0x38] sm:$0xff]  ;;  %2122 = vmatprep.mubr.f32.mxu0 %v134_v9  ;;  %v270_v12 = vld [vmem:[#allocation8] sm:$0xff]  ;;  %v271_v13 = vld [vmem:[#allocation8 + $0x8] sm:$0xff] }
  0x81   :  { %2577 = vmatpush3.bf16.msra.mxu0 %v2574_v3  ;;  %v2586_v14 = vpack.c.bf16 %v149_v11, %v148_v10  ;;  %v3420_v15 = vpack.c.bf16 %v271_v13, %v270_v12  ;;  %v272_v16 = vld [vmem:[#allocation8 + $0x10] sm:$0xff]  ;;  %v273_v17 = vld [vmem:[#allocation8 + $0x18] sm:$0xff]  ;;  %v150_v18 = vld [vmem:[#allocation7 + $0x40] sm:$0xff] }
  0x82   :  { %2579 = vmatprep.subr.bf16.mxu0 %v2578_v5  ;;  %v151_v19 = vld [vmem:[#allocation7 + $0x48] sm:$0xff]  ;;  %v3422_v20 = vpack.c.bf16 %v273_v17, %v272_v16  ;;  %v274_v21 = vld [vmem:[#allocation8 + $0x20] sm:$0xff]  ;;  %v152_v24 = vld [vmem:[#allocation7 + $0x50] sm:$0xff] }
  0x83   :  { %2607 = vmatprep.subr.bf16.mxu1 %v3420_v15  ;;  %v275_v22 = vld [vmem:[#allocation8 + $0x28] sm:$0xff]  ;;  %v2590_v23 = vpack.c.bf16 %v151_v19, %v150_v18  ;;  %v153_v26 = vld [vmem:[#allocation7 + $0x58] sm:$0xff]  ;;  %v276_v27 = vld [vmem:[#allocation8 + $0x30] sm:$0xff] }
  0x84   :  { %2609 = vmatpush3.bf16.msra.mxu1 %v3420_v15  ;;  %v3427_v25 = vpack.c.bf16 %v275_v22, %v274_v21  ;;  %v277_v28 = vld [vmem:[#allocation8 + $0x38] sm:$0xff]  ;;  %v2594_v29 = vpack.c.bf16 %v153_v26, %v152_v24  ;;  %v154_v30 = vld [vmem:[#allocation7 + $0x60] sm:$0xff]  ;;  %v155_v32 = vld [vmem:[#allocation7 + $0x68] sm:$0xff] }
  0x85   :  { %2581 = vmatpush3.bf16.msra.mxu0 %v2578_v5  ;;  %2611 = vmatprep.subr.bf16.mxu1 %v3422_v20  ;;  %v3431_v31 = vpack.c.bf16 %v277_v28, %v276_v27  ;;  %v278_v33 = vld [vmem:[#allocation8 + $0x40] sm:$0xff]  ;;  %v279_v34 = vld [vmem:[#allocation8 + $0x48] sm:$0xff]  ;;  %v2598_v35 = vpack.c.bf16 %v155_v32, %v154_v30  ;;  %v156_v36 = vld [vmem:[#allocation7 + $0x70] sm:$0xff] }
  0x86   :  { %2583 = vmatprep.subr.bf16.mxu0 %v2582_v8  ;;  %v3435_v37 = vpack.c.bf16 %v279_v34, %v278_v33  ;;  %v157_v38 = vld [vmem:[#allocation7 + $0x78] sm:$0xff]  ;;  %v280_v39 = vld [vmem:[#allocation8 + $0x50] sm:$0xff]  ;;  %v392_v42 = vld [vmem:[#allocation8 + $0x80] sm:$0xff] }
  0x87   :  { %v281_v40 = vld [vmem:[#allocation8 + $0x58] sm:$0xff]  ;;  %v2602_v41 = vpack.c.bf16 %v157_v38, %v156_v36  ;;  %v393_v44 = vld [vmem:[#allocation8 + $0x88] sm:$0xff]  ;;  %v282_v45 = vld [vmem:[#allocation8 + $0x60] sm:$0xff] }
  0x88   :  { %2613 = vmatpush3.bf16.msra.mxu1 %v3422_v20  ;;  %v3439_v43 = vpack.c.bf16 %v281_v40, %v280_v39  ;;  %v283_v46 = vld [vmem:[#allocation8 + $0x68] sm:$0xff]  ;;  %v3442_v47 = vpack.c.bf16 %v393_v44, %v392_v42  ;;  %v394_v49 = vld [vmem:[#allocation8 + $0x90] sm:$0xff]  ;;  %v395_v50 = vld [vmem:[#allocation8 + $0x98] sm:$0xff] }
  0x89   :  { %2585 = vmatpush3.bf16.msra.mxu0 %v2582_v8  ;;  %2615 = vmatprep.subr.bf16.mxu1 %v3427_v25  ;;  %v3445_v48 = vpack.c.bf16 %v283_v46, %v282_v45  ;;  %v135_v51 = vld [vmem:[#allocation2 + $0x8] sm:$0xff]  ;;  %v136_v52 = vld [vmem:[#allocation2 + $0x10] sm:$0xff]  ;;  %v3449_v53 = vpack.c.bf16 %v395_v50, %v394_v49  ;;  %v396_v54 = vld [vmem:[#allocation8 + $0xa0] sm:$0xff] }
  0x8a   :  { %2587 = vmatprep.subr.bf16.mxu0 %v2586_v14  ;;  %v397_v55 = vld [vmem:[#allocation8 + $0xa8] sm:$0xff]  ;;  %v137_v56 = vld [vmem:[#allocation2 + $0x18] sm:$0xff]  ;;  %v138_v57 = vld [vmem:[#allocation2 + $0x20] sm:$0xff] }
  0x8b   :  { %v3454_v58 = vpack.c.bf16 %v397_v55, %v396_v54  ;;  %v398_v59 = vld [vmem:[#allocation8 + $0xb0] sm:$0xff]  ;;  %v399_v60 = vld [vmem:[#allocation8 + $0xb8] sm:$0xff]  ;;  %v139_v61 = vld [vmem:[#allocation2 + $0x28] sm:$0xff] }
  0x8c   :  { %2617 = vmatpush3.bf16.msra.mxu1 %v3427_v25  ;;  %v140_v62 = vld [vmem:[#allocation2 + $0x30] sm:$0xff]  ;;  %v3459_v63 = vpack.c.bf16 %v399_v60, %v398_v59  ;;  %v400_v0 = vld [vmem:[#allocation8 + $0xc0] sm:$0xff]  ;;  %v401_v1 = vld [vmem:[#allocation8 + $0xc8] sm:$0xff] }
  0x8d   :  { %2589 = vmatpush3.bf16.msra.mxu0 %v2586_v14  ;;  %2619 = vmatprep.subr.bf16.mxu1 %v3431_v31  ;;  %v141_v2 = vld [vmem:[#allocation2 + $0x38] sm:$0xff]  ;;  %v3463_v3 = vpack.c.bf16 %v401_v1, %v400_v0  ;;  %v402_v4 = vld [vmem:[#allocation8 + $0xd0] sm:$0xff]  ;;  %v404_v7 = vld [vmem:[#allocation8 + $0xe0] sm:$0xff] }
  0x8e   :  { %2591 = vmatprep.subr.bf16.mxu0 %v2590_v23  ;;  %v403_v5 = vld [vmem:[#allocation8 + $0xd8] sm:$0xff]  ;;  %v405_v8 = vld [vmem:[#allocation8 + $0xe8] sm:$0xff]  ;;  %v284_v10 = vld [vmem:[#allocation8 + $0x70] sm:$0xff] }
  0x8f   :  { %v3467_v6 = vpack.c.bf16 %v403_v5, %v402_v4  ;;  %v3471_v9 = vpack.c.bf16 %v405_v8, %v404_v7  ;;  %v285_v11 = vld [vmem:[#allocation8 + $0x78] sm:$0xff]  ;;  %v406_v12 = vld [vmem:[#allocation8 + $0xf0] sm:$0xff]  ;;  %v514_v17 = vld [vmem:[#allocation8 + $0x100] sm:$0xff] }
  0x90   :  { %2621 = vmatpush3.bf16.msra.mxu1 %v3431_v31  ;;  %v3476_v13 = vpack.c.bf16 %v285_v11, %v284_v10  ;;  %v407_v14 = vld [vmem:[#allocation8 + $0xf8] sm:$0xff]  ;;  %v515_v18 = vld [vmem:[#allocation8 + $0x108] sm:$0xff]  ;;  %v651_v19 = vld [vmem:[#allocation10] sm:$0xff] }
  0x91   :  { %2593 = vmatpush3.bf16.msra.mxu0 %v2590_v23  ;;  %2623 = vmatprep.subr.bf16.mxu1 %v3435_v37  ;;  %v3478_v16 = vpack.c.bf16 %v407_v14, %v406_v12  ;;  %v3484_v21 = vpack.c.bf16 %v515_v18, %v514_v17  ;;  %v652_v22 = vld [vmem:[#allocation10 + $0x8] sm:$0xff]  ;;  %v1798_v24 = vld [vmem:[%s3890_s3] ss:$0 sm:$0xff]  ;;  %v516_v26 = vld [vmem:[#allocation8 + $0x110] sm:$0xff] }
  0x92   :  { %2595 = vmatprep.subr.bf16.mxu0 %v2594_v29  ;;  %v3486_v23 = vpack.c.bf16 %v652_v22, %v651_v19  ;;  %v517_v28 = vld [vmem:[#allocation8 + $0x118] sm:$0xff]  ;;  %v518_v38 = vld [vmem:[#allocation8 + $0x120] sm:$0xff]  ;;  %v519_v40 = vld [vmem:[#allocation8 + $0x128] sm:$0xff] }
  0x93   :  { %v654_v30 = vld [vmem:[#allocation10 + $0x18] sm:$0xff]  ;;  %v656_v42 = vld [vmem:[#allocation10 + $0x28] sm:$0xff]  ;;  %v3513_v49 = vpack.c.bf16 %v519_v40, %v518_v38  ;;  %v657_v55 = vld [vmem:[#allocation10 + $0x30] sm:$0xff] }
  0x94   :  { %2625 = vmatpush3.bf16.msra.mxu1 %v3435_v37  ;;  %v521_v54 = vld [vmem:[#allocation8 + $0x138] sm:$0xff]  ;;  %v522_v1 = vld [vmem:[#allocation8 + $0x140] sm:$0xff]  ;;  %v523_v4 = vld [vmem:[#allocation8 + $0x148] sm:$0xff] }
  0x95   :  { %2597 = vmatpush3.bf16.msra.mxu0 %v2594_v29  ;;  %2627 = vmatprep.subr.bf16.mxu1 %v3439_v43  ;;  %v653_v29 = vld [vmem:[#allocation10 + $0x10] sm:$0xff]  ;;  %v659_v5 = vld [vmem:[#allocation10 + $0x40] sm:$0xff]  ;;  %v660_v7 = vld [vmem:[#allocation10 + $0x48] sm:$0xff]  ;;  %v3547_v12 = vpack.c.bf16 %v523_v4, %v522_v1 }
  0x96   :  { %2599 = vmatprep.subr.bf16.mxu0 %v2598_v35  ;;  %v3499_v36 = vpack.c.bf16 %v654_v30, %v653_v29  ;;  %v524_v11 = vld [vmem:[#allocation8 + $0x150] sm:$0xff]  ;;  %v3549_v14 = vpack.c.bf16 %v660_v7, %v659_v5  ;;  %v525_v17 = vld [vmem:[#allocation8 + $0x158] sm:$0xff]  ;;  %v664_v29 = vld [vmem:[#allocation10 + $0x68] sm:$0xff] }
  0x97   :  { %v661_v18 = vld [vmem:[#allocation10 + $0x50] sm:$0xff]  ;;  %v662_v19 = vld [vmem:[#allocation10 + $0x58] sm:$0xff]  ;;  %v3557_v22 = vpack.c.bf16 %v525_v17, %v524_v11 }
  0x98   :  { %2629 = vmatpush3.bf16.msra.mxu1 %v3439_v43  ;;  %v529_v38 = vld [vmem:[#allocation8 + $0x178] sm:$0xff] }
  0x99   :  { %2601 = vmatpush3.bf16.msra.mxu0 %v2598_v35  ;;  %2631 = vmatprep.subr.bf16.mxu1 %v3445_v48  ;;  %v3497_v35 = vpack.c.bf16 %v517_v28, %v516_v26  ;;  %v526_v26 = vld [vmem:[#allocation8 + $0x160] sm:$0xff]  ;;  %v666_v40 = vld [vmem:[#allocation10 + $0x78] sm:$0xff] }
  0x9a   :  { %2603 = vmatprep.subr.bf16.mxu0 %v2602_v41  ;;  %v663_v28 = vld [vmem:[#allocation10 + $0x60] sm:$0xff] }
  0x9c   :  { %2633 = vmatpush3.bf16.msra.mxu1 %v3445_v48 }
  0x9d   :  { %2605 = vmatpush3.bf16.msra.mxu0 %v2602_v41  ;;  %2635 = vmatprep.subr.bf16.mxu1 %v3476_v13  ;;  %v655_v41 = vld [vmem:[#allocation10 + $0x20] sm:$0xff] }
  0x9e   :  { %2639 = vmatprep.subr.bf16.mxu0 %v3442_v47  ;;  %v3515_v50 = vpack.c.bf16 %v656_v42, %v655_v41 }
  0xa0   :  { %2123 = vmatmul.mubr.f32.vlgmr.msra.gmra.mrb[0].mxu0 %v135_v51  ;;  %2637 = vmatpush3.bf16.msra.mxu1 %v3476_v13  ;;  %v520_v51 = vld [vmem:[#allocation8 + $0x130] sm:$0xff] }
  0xa1   :  { %2125 = vmatprep.mubr.f32.mxu0 %v136_v52  ;;  %2641 = vmatpush3.bf16.msra.mxu0 %v3442_v47 }
  0xa2   :  { %2643 = vmatprep.subr.bf16.mxu0 %v3449_v53  ;;  %2671 = vmatprep.subr.bf16.mxu1 %v3484_v21 }
  0xa4   :  { %2126 = vmatmul.mubr.f32.gmra.mrb[2].mxu0 %v137_v56  ;;  %v658_v56 = vld [vmem:[#allocation10 + $0x38] sm:$0xff] }
  0xa5   :  { %2128 = vmatprep.mubr.f32.mxu0 %v138_v57  ;;  %2645 = vmatpush3.bf16.msra.mxu0 %v3449_v53 }
  0xa6   :  { %2647 = vmatprep.subr.bf16.mxu0 %v3454_v58 }
  0xa8   :  { %2129 = vmatmul.mubr.f32.gmra.mrb[4].mxu0 %v139_v61  ;;  %v3529_v61 = vpack.c.bf16 %v521_v54, %v520_v51 }
  0xa9   :  { %2131 = vmatprep.mubr.f32.mxu0 %v140_v62  ;;  %2649 = vmatpush3.bf16.msra.mxu0 %v3454_v58  ;;  %v3531_v62 = vpack.c.bf16 %v658_v56, %v657_v55 }
  0xaa   :  { %2651 = vmatprep.subr.bf16.mxu0 %v3459_v63 }
  0xac   :  { %2132 = vmatmul.mubr.f32.gmra.mrb[6].mxu0 %v141_v2 }
  0xad   :  { %2653 = vmatpush3.bf16.msra.mxu0 %v3459_v63 }
  0xae   :  { %2655 = vmatprep.subr.bf16.mxu0 %v3463_v3 }
  0xb1   :  { %2657 = vmatpush3.bf16.msra.mxu0 %v3463_v3 }
  0xb2   :  { %2659 = vmatprep.subr.bf16.mxu0 %v3467_v6 }
  0xb5   :  { %2661 = vmatpush3.bf16.msra.mxu0 %v3467_v6 }
  0xb6   :  { %2663 = vmatprep.subr.bf16.mxu0 %v3471_v9 }
  0xb9   :  { %2665 = vmatpush3.bf16.msra.mxu0 %v3471_v9 }
  0xba   :  { %2667 = vmatprep.subr.bf16.mxu0 %v3478_v16 }
  0xbd   :  { %2669 = vmatpush3.bf16.msra.mxu0 %v3478_v16 }
  0xbe   :  { %2703 = vmatprep.subr.bf16.mxu0 %v3486_v23 }
 0x173   :  { %v2124_v27 = vpop.f32.mrb[0].mxu0 }
 0x174   :  { %v231_v32 = vpop.f32.mrb[1].mxu0  ;;  %v3495_v34 = vadd.f32 %v2124_v27, %v1798_v24  ;;  %v527_v27 = vld [vmem:[#allocation8 + $0x168] sm:$0xff] }
 0x175   :  { %v3493_v33 = vadd.f32 %v1798_v24, %v231_v32  ;;  %v3567_v30 = vpack.c.bf16 %v527_v27, %v526_v26  ;;  %v3569_v32 = vpack.c.bf16 %v664_v29, %v663_v28 }
 0x177   :  { %v2127_v39 = vpop.f32.mrb[2].mxu0  ;;  %2166 = vmatprep.mubr.f32.mxu1 %v3493_v33  ;;  %2210 = vmatprep.mubr.f32.mxu0 %v3493_v33 }
 0x178   :  { %v241_v44 = vpop.f32.mrb[3].mxu0  ;;  %2167 = vmatmul.mubr.f32.vlgmr.msra.gmra.mrb[0].mxu1 %v3495_v34  ;;  %2211 = vmatmul.mubr.f32.vlgmr.msra.gmra.mrb[8].mxu0 %v3495_v34  ;;  %v3509_v46 = vadd.f32 %v2127_v39, %v1798_v24  ;;  %v665_v39 = vld [vmem:[#allocation10 + $0x70] sm:$0xff] }
 0x179   :  { %v3505_v45 = vadd.f32 %v1798_v24, %v241_v44  ;;  %2673 = vmatpush3.bf16.msra.mxu1 %v3484_v21  ;;  %2705 = vmatpush3.bf16.msra.mxu0 %v3486_v23  ;;  %v3577_v42 = vpack.c.bf16 %v666_v40, %v665_v39 }
 0x17a   :  { %2675 = vmatprep.subr.bf16.mxu1 %v3497_v35  ;;  %2707 = vmatprep.subr.bf16.mxu0 %v3499_v36 }
 0x17b   :  { %v2130_v52 = vpop.f32.mrb[4].mxu0  ;;  %2169 = vmatprep.mubr.f32.mxu1 %v3505_v45  ;;  %2213 = vmatprep.mubr.f32.mxu0 %v3505_v45 }
 0x17c   :  { %v251_v57 = vpop.f32.mrb[5].mxu0  ;;  %2170 = vmatmul.mubr.f32.gmra.mrb[2].mxu1 %v3509_v46  ;;  %2214 = vmatmul.mubr.f32.gmra.mrb[10].mxu0 %v3509_v46  ;;  %v3525_v60 = vadd.f32 %v2130_v52, %v1798_v24 }
 0x17d   :  { %v3521_v59 = vadd.f32 %v1798_v24, %v251_v57  ;;  %2677 = vmatpush3.bf16.msra.mxu1 %v3497_v35  ;;  %2709 = vmatpush3.bf16.msra.mxu0 %v3499_v36 }
 0x17e   :  { %2679 = vmatprep.subr.bf16.mxu1 %v3513_v49  ;;  %2711 = vmatprep.subr.bf16.mxu0 %v3515_v50 }
 0x17f   :  { %v2133_v0 = vpop.f32.mrb[6].mxu0  ;;  %2172 = vmatprep.mubr.f32.mxu1 %v3521_v59  ;;  %2216 = vmatprep.mubr.f32.mxu0 %v3521_v59 }
 0x180   :  { %v261_v2 = vpop.f32.mrb[7].mxu0  ;;  %2173 = vmatmul.mubr.f32.gmra.mrb[4].mxu1 %v3525_v60  ;;  %2217 = vmatmul.mubr.f32.gmra.mrb[12].mxu0 %v3525_v60  ;;  %v3541_v10 = vadd.f32 %v2133_v0, %v1798_v24 }
 0x181   :  { %v3537_v8 = vadd.f32 %v1798_v24, %v261_v2  ;;  %2681 = vmatpush3.bf16.msra.mxu1 %v3513_v49  ;;  %2713 = vmatpush3.bf16.msra.mxu0 %v3515_v50  ;;  %v3559_v24 = vpack.c.bf16 %v662_v19, %v661_v18 }
 0x182   :  { %2683 = vmatprep.subr.bf16.mxu1 %v3529_v61  ;;  %2715 = vmatprep.subr.bf16.mxu0 %v3531_v62 }
 0x183   :  { %2175 = vmatprep.mubr.f32.mxu1 %v3537_v8  ;;  %2219 = vmatprep.mubr.f32.mxu0 %v3537_v8 }
 0x184   :  { %2176 = vmatmul.mubr.f32.gmra.mrb[6].mxu1 %v3541_v10  ;;  %2220 = vmatmul.mubr.f32.gmra.mrb[14].mxu0 %v3541_v10 }
 0x185   :  { %2685 = vmatpush3.bf16.msra.mxu1 %v3529_v61  ;;  %2717 = vmatpush3.bf16.msra.mxu0 %v3531_v62 }
 0x186   :  { %2254 = vmatprep.mubr.f32.mxu1 %v3493_v33  ;;  %2298 = vmatprep.mubr.f32.mxu0 %v3493_v33  ;;  %v528_v33 = vld [vmem:[#allocation8 + $0x170] sm:$0xff] }
 0x187   :  { %2687 = vmatprep.subr.bf16.mxu1 %v3547_v12  ;;  %2719 = vmatprep.subr.bf16.mxu0 %v3549_v14  ;;  %v3575_v41 = vpack.c.bf16 %v529_v38, %v528_v33 }
 0x189   :  { %2689 = vmatpush3.bf16.msra.mxu1 %v3547_v12  ;;  %2721 = vmatpush3.bf16.msra.mxu0 %v3549_v14 }
 0x18a   :  { %2691 = vmatprep.subr.bf16.mxu1 %v3557_v22  ;;  %2723 = vmatprep.subr.bf16.mxu0 %v3559_v24 }
 0x18d   :  { %2693 = vmatpush3.bf16.msra.mxu1 %v3557_v22  ;;  %2725 = vmatpush3.bf16.msra.mxu0 %v3559_v24 }
 0x18e   :  { %2695 = vmatprep.subr.bf16.mxu1 %v3567_v30  ;;  %2727 = vmatprep.subr.bf16.mxu0 %v3569_v32 }
 0x191   :  { %2697 = vmatpush3.bf16.msra.mxu1 %v3567_v30  ;;  %2729 = vmatpush3.bf16.msra.mxu0 %v3569_v32 }
 0x192   :  { %2699 = vmatprep.subr.bf16.mxu1 %v3575_v41  ;;  %2731 = vmatprep.subr.bf16.mxu0 %v3577_v42 }
 0x195   :  { %2701 = vmatpush3.bf16.msra.mxu1 %v3575_v41  ;;  %2733 = vmatpush3.bf16.msra.mxu0 %v3577_v42 }
 0x196   :  { %2771 = vmatprep.subr.bf16.mxu0 %v3420_v15 }
 0x198   :  { %2255 = vmatmul.mubr.f32.vlgmr.msra.gmra.mrb[8].mxu1 %v3495_v34  ;;  %2299 = vmatmul.mubr.f32.vlgmr.msra.gmra.mrb[16].mxu0 %v3495_v34 }
 0x199   :  { %2257 = vmatprep.mubr.f32.mxu1 %v3505_v45  ;;  %2301 = vmatprep.mubr.f32.mxu0 %v3505_v45 }
 0x19a   :  { %2773 = vmatpush3.bf16.msra.mxu0 %v3420_v15  ;;  %v3256_v15 = vmov 0.0|0.0  }
 0x19b   :  { %2775 = vmatprep.subr.bf16.mxu0 %v3422_v20  ;;  %2734 = vmatprep.subr.bf16.mxu1 %v3256_v15 }
 0x19c   :  { %2258 = vmatmul.mubr.f32.gmra.mrb[10].mxu1 %v3509_v46  ;;  %2302 = vmatmul.mubr.f32.gmra.mrb[18].mxu0 %v3509_v46 }
 0x19d   :  { %2260 = vmatprep.mubr.f32.mxu1 %v3521_v59  ;;  %2304 = vmatprep.mubr.f32.mxu0 %v3521_v59 }
 0x19e   :  { %2777 = vmatpush3.bf16.msra.mxu0 %v3422_v20  ;;  %v3617_v20 = vld [vmem:[#allocation5 + $0x8] sm:$0xff] }
 0x19f   :  { %2779 = vmatprep.subr.bf16.mxu0 %v3427_v25 }
 0x1a0   :  { %2261 = vmatmul.mubr.f32.gmra.mrb[12].mxu1 %v3525_v60  ;;  %2305 = vmatmul.mubr.f32.gmra.mrb[20].mxu0 %v3525_v60 }
 0x1a1   :  { %2263 = vmatprep.mubr.f32.mxu1 %v3537_v8  ;;  %2307 = vmatprep.mubr.f32.mxu0 %v3537_v8 }
 0x1a2   :  { %2781 = vmatpush3.bf16.msra.mxu0 %v3427_v25 }
 0x1a3   :  { %2783 = vmatprep.subr.bf16.mxu0 %v3431_v31 }
 0x1a4   :  { %2264 = vmatmul.mubr.f32.gmra.mrb[14].mxu1 %v3541_v10  ;;  %2308 = vmatmul.mubr.f32.gmra.mrb[22].mxu0 %v3541_v10 }
 0x1a5   :  { %1799 = vmatprep.mubr.msk.f32.mxu1 %vm772_vm0, %v3617_v20 }
 0x1a6   :  { %2785 = vmatpush3.bf16.msra.mxu0 %v3431_v31 }
 0x1a7   :  { %2787 = vmatprep.subr.bf16.mxu0 %v3435_v37 }
 0x1aa   :  { %2789 = vmatpush3.bf16.msra.mxu0 %v3435_v37 }
 0x1ab   :  { %2791 = vmatprep.subr.bf16.mxu0 %v3439_v43 }
 0x1ae   :  { %2793 = vmatpush3.bf16.msra.mxu0 %v3439_v43 }
 0x1af   :  { %2795 = vmatprep.subr.bf16.mxu0 %v3445_v48 }
 0x1b2   :  { %2797 = vmatpush3.bf16.msra.mxu0 %v3445_v48 }
 0x1b3   :  { %2799 = vmatprep.subr.bf16.mxu0 %v3476_v13 }
 0x1b6   :  { %2801 = vmatpush3.bf16.msra.mxu0 %v3476_v13 }
 0x1b7   :  { %2835 = vmatprep.subr.bf16.mxu0 %v3484_v21 }
 0x24b   :  { %v2168_v25 = vpop.f32.mrb[0].mxu1  ;;  %v2212_v31 = vpop.f32.mrb[8].mxu0 }
 0x24c   :  { %v352_v37 = vpop.f32.mrb[1].mxu1  ;;  %v474_v43 = vpop.f32.mrb[9].mxu0 }
 0x24d   :  { %v2735_v48 = vpack.c.bf16 %v2168_v25, %v352_v37  ;;  %v2747_v34 = vpack.c.bf16 %v2212_v31, %v474_v43 }
 0x24f   :  { %v2171_v44 = vpop.f32.mrb[2].mxu1  ;;  %v2215_v45 = vpop.f32.mrb[10].mxu0  ;;  %2736 = vmatpush1.bf16.msra.mxu1 %v2735_v48 }
 0x250   :  { %v362_v13 = vpop.f32.mrb[3].mxu1  ;;  %v484_v46 = vpop.f32.mrb[11].mxu0  ;;  %2737 = vmatprep.subr.bf16.mxu1 %v3256_v15 }
 0x251   :  { %v2738_v51 = vpack.c.bf16 %v2171_v44, %v362_v13  ;;  %v2750_v52 = vpack.c.bf16 %v2215_v45, %v484_v46  ;;  %v3648_v44 = vld [vmem:[#allocation5] sm:$0xff]  ;;  %v3650_v45 = vld [vmem:[#allocation5 + $0x18] sm:$0xff]  ;;  %v3656_v13 = vld [vmem:[#allocation5 + $0x10] sm:$0xff] }
 0x252   :  { %v3659_v46 = vld [vmem:[#allocation5 + $0x28] sm:$0xff] }
 0x253   :  { %v2174_v54 = vpop.f32.mrb[4].mxu1  ;;  %v2218_v55 = vpop.f32.mrb[12].mxu0  ;;  %2739 = vmatpush1.bf16.msra.mxu1 %v2738_v51  ;;  %v3665_v51 = vld [vmem:[#allocation5 + $0x20] sm:$0xff] }
 0x254   :  { %v372_v56 = vpop.f32.mrb[5].mxu1  ;;  %v494_v57 = vpop.f32.mrb[13].mxu0  ;;  %2740 = vmatprep.subr.bf16.mxu1 %v3256_v15 }
 0x255   :  { %v2741_v59 = vpack.c.bf16 %v2174_v54, %v372_v56  ;;  %v2753_v60 = vpack.c.bf16 %v2218_v55, %v494_v57  ;;  %v3677_v54 = vld [vmem:[#allocation5 + $0x48] sm:$0xff]  ;;  %v3686_v55 = vld [vmem:[#allocation5 + $0x58] sm:$0xff] }
 0x256   :  { %v3695_v56 = vld [vmem:[#allocation5 + $0x68] sm:$0xff]  ;;  %v3704_v57 = vld [vmem:[#allocation5 + $0x78] sm:$0xff] }
 0x257   :  { %v2177_v0 = vpop.f32.mrb[6].mxu1  ;;  %v2221_v1 = vpop.f32.mrb[14].mxu0  ;;  %2742 = vmatpush1.bf16.msra.mxu1 %v2741_v59  ;;  %v3720_v59 = vld [vmem:[%s3893_s6] ss:$0 sm:$0xff] }
 0x258   :  { %v382_v2 = vpop.f32.mrb[7].mxu1  ;;  %v504_v4 = vpop.f32.mrb[15].mxu0  ;;  %2743 = vmatprep.subr.bf16.mxu1 %v3256_v15 }
 0x259   :  { %v2744_v5 = vpack.c.bf16 %v2177_v0, %v382_v2  ;;  %v2756_v7 = vpack.c.bf16 %v2221_v1, %v504_v4 }
 0x25b   :  { %2745 = vmatpush1.bf16.msra.mxu1 %v2744_v5 }
 0x25c   :  { %2746 = vmatprep.subr.bf16.mxu1 %v3256_v15 }
 0x25f   :  { %2748 = vmatpush1.bf16.msra.mxu1 %v2747_v34 }
 0x260   :  { %2749 = vmatprep.subr.bf16.mxu1 %v3256_v15 }
 0x263   :  { %2751 = vmatpush1.bf16.msra.mxu1 %v2750_v52  ;;  %v3668_v52 = vld [vmem:[#allocation5 + $0x38] sm:$0xff] }
 0x264   :  { %2752 = vmatprep.subr.bf16.mxu1 %v3256_v15 }
 0x267   :  { %2754 = vmatpush1.bf16.msra.mxu1 %v2753_v60 }
 0x268   :  { %2755 = vmatprep.subr.bf16.mxu1 %v3256_v15 }
 0x26b   :  { %v2256_v8 = vpop.f32.mrb[8].mxu1  ;;  %v3628_v10 = vpop.f32.mrb[16].mxu0  ;;  %2757 = vmatpush1.bf16.msra.mxu1 %v2756_v7 }
 0x26c   :  { %v596_v11 = vpop.f32.mrb[9].mxu1  ;;  %v3630_v17 = vpop.f32.mrb[17].mxu0  ;;  %2758 = vmatprep.subr.bf16.mxu1 %v3256_v15 }
 0x26d   :  { %v2759_v18 = vpack.c.bf16 %v2256_v8, %v596_v11 }
 0x26f   :  { %v2259_v19 = vpop.f32.mrb[10].mxu1  ;;  %v3633_v26 = vpop.f32.mrb[18].mxu0  ;;  %2760 = vmatpush1.bf16.msra.mxu1 %v2759_v18 }
 0x270   :  { %v606_v27 = vpop.f32.mrb[11].mxu1  ;;  %v3635_v28 = vpop.f32.mrb[19].mxu0  ;;  %2761 = vmatprep.subr.bf16.mxu1 %v3256_v15 }
 0x271   :  { %v2762_v29 = vpack.c.bf16 %v2259_v19, %v606_v27 }
 0x273   :  { %v2262_v33 = vpop.f32.mrb[12].mxu1  ;;  %v3638_v38 = vpop.f32.mrb[20].mxu0  ;;  %2763 = vmatpush1.bf16.msra.mxu1 %v2762_v29 }
 0x274   :  { %v616_v39 = vpop.f32.mrb[13].mxu1  ;;  %v3640_v40 = vpop.f32.mrb[21].mxu0  ;;  %2764 = vmatprep.subr.bf16.mxu1 %v3256_v15 }
 0x275   :  { %v2765_v25 = vpack.c.bf16 %v2262_v33, %v616_v39 }
 0x277   :  { %v2265_v31 = vpop.f32.mrb[14].mxu1  ;;  %v3643_v37 = vpop.f32.mrb[22].mxu0  ;;  %2766 = vmatpush1.bf16.msra.mxu1 %v2765_v25 }
 0x278   :  { %v626_v43 = vpop.f32.mrb[15].mxu1  ;;  %v3645_v48 = vpop.f32.mrb[23].mxu0  ;;  %2767 = vmatprep.subr.bf16.mxu1 %v3256_v15 }
 0x279   :  { %v2768_v34 = vpack.c.bf16 %v2265_v31, %v626_v43 }
 0x27b   :  { %2769 = vmatpush1.bf16.msra.mxu1 %v2768_v34 }
 0x27c   :  { %2803 = vmatprep.subr.bf16.mxu1 %v3442_v47 }
 0x27e   :  { %862 = vmatmul.mubr.f32.vlgmr.msra.gmra.mrb[16].mxu1 %v3648_v44 }
 0x27f   :  { %1800 = vmatprep.mubr.msk.f32.mxu1 %vm772_vm0, %v3650_v45  ;;  %2805 = vmatpush3.bf16.msra.mxu1 %v3442_v47  ;;  %v3674_v47 = vld [vmem:[#allocation5 + $0x30] sm:$0xff] }
 0x280   :  { %2807 = vmatprep.subr.bf16.mxu1 %v3449_v53 }
 0x282   :  { %867 = vmatmul.mubr.f32.gmra.mrb[18].mxu1 %v3656_v13 }
 0x283   :  { %1801 = vmatprep.mubr.msk.f32.mxu1 %vm772_vm0, %v3659_v46  ;;  %2809 = vmatpush3.bf16.msra.mxu1 %v3449_v53  ;;  %v3683_v53 = vld [vmem:[#allocation5 + $0x40] sm:$0xff] }
 0x284   :  { %2811 = vmatprep.subr.bf16.mxu1 %v3454_v58 }
 0x286   :  { %872 = vmatmul.mubr.f32.gmra.mrb[20].mxu1 %v3665_v51 }
 0x287   :  { %1802 = vmatprep.mubr.msk.f32.mxu1 %vm772_vm0, %v3668_v52  ;;  %2813 = vmatpush3.bf16.msra.mxu1 %v3454_v58  ;;  %v3692_v58 = vld [vmem:[#allocation5 + $0x50] sm:$0xff] }
 0x288   :  { %2815 = vmatprep.subr.bf16.mxu1 %v3459_v63 }
 0x28a   :  { %877 = vmatmul.mubr.f32.gmra.mrb[22].mxu1 %v3674_v47 }
 0x28b   :  { %1803 = vmatprep.mubr.msk.f32.mxu1 %vm772_vm0, %v3677_v54  ;;  %2817 = vmatpush3.bf16.msra.mxu1 %v3459_v63  ;;  %v3701_v63 = vld [vmem:[#allocation5 + $0x60] sm:$0xff] }
 0x28c   :  { %2819 = vmatprep.subr.bf16.mxu1 %v3463_v3 }
 0x28e   :  { %882 = vmatmul.mubr.f32.gmra.mrb[24].mxu1 %v3683_v53 }
 0x28f   :  { %1804 = vmatprep.mubr.msk.f32.mxu1 %vm772_vm0, %v3686_v55  ;;  %2821 = vmatpush3.bf16.msra.mxu1 %v3463_v3  ;;  %v3710_v3 = vld [vmem:[#allocation5 + $0x70] sm:$0xff] }
 0x290   :  { %2823 = vmatprep.subr.bf16.mxu1 %v3467_v6 }
 0x292   :  { %887 = vmatmul.mubr.f32.gmra.mrb[26].mxu1 %v3692_v58 }
 0x293   :  { %1805 = vmatprep.mubr.msk.f32.mxu1 %vm772_vm0, %v3695_v56  ;;  %2825 = vmatpush3.bf16.msra.mxu1 %v3467_v6 }
 0x294   :  { %2827 = vmatprep.subr.bf16.mxu1 %v3471_v9 }
 0x296   :  { %892 = vmatmul.mubr.f32.gmra.mrb[28].mxu1 %v3701_v63 }
 0x297   :  { %1806 = vmatprep.mubr.msk.f32.mxu1 %vm772_vm0, %v3704_v57  ;;  %2829 = vmatpush3.bf16.msra.mxu1 %v3471_v9 }
 0x298   :  { %2831 = vmatprep.subr.bf16.mxu1 %v3478_v16 }
 0x29a   :  { %897 = vmatmul.mubr.f32.gmra.mrb[30].mxu1 %v3710_v3 }
 0x29b   :  { %2833 = vmatpush3.bf16.msra.mxu1 %v3478_v16 }
 0x29c   :  { %2867 = vmatprep.subr.bf16.mxu1 %v3486_v23 }
 0x351   :  { %v863_v6 = vpop.f32.mrb[16].mxu1 }
 0x352   :  { %v864_v60 = vadd.f32 %v863_v6, %v3630_v17  ;;  %v865_v0 = vpop.f32.mrb[17].mxu1 }
 0x354   :  { %v909_v1 = vadd.f32 %v3720_v59, %v864_v60 }
 0x355   :  { %v868_v9 = vpop.f32.mrb[18].mxu1 }
 0x356   :  { %v3724_v2 = vmax.f32 %v909_v1, 0.0  ;;  %v869_v4 = vadd.f32 %v3628_v10, %v868_v9  ;;  %v870_v5 = vpop.f32.mrb[19].mxu1  ;;  %v1472_v1 = vld [vmem:[#allocation11 + $0x30] sm:$0xff]  ;;  %v1473_v9 = vld [vmem:[#allocation11 + $0x38] sm:$0xff] }
 0x357   :  { %v1475_v5 = vld [vmem:[#allocation11 + $0x48] sm:$0xff] }
 0x358   :  { %v910_v16 = vadd.f32 %v3720_v59, %v869_v4  ;;  %2342 = vmatprep.mubr.f32.mxu0 %v3724_v2  ;;  %2386 = vmatprep.mubr.f32.mxu1 %v3724_v2  ;;  %v1474_v4 = vld [vmem:[#allocation11 + $0x40] sm:$0xff] }
 0x359   :  { %v873_v7 = vpop.f32.mrb[20].mxu1 }
 0x35a   :  { %v3730_v8 = vmax.f32 %v910_v16, 0.0  ;;  %v874_v11 = vadd.f32 %v873_v7, %v3635_v28  ;;  %v875_v17 = vpop.f32.mrb[21].mxu1  ;;  %v1476_v16 = vld [vmem:[#allocation11 + $0x50] sm:$0xff]  ;;  %v1477_v7 = vld [vmem:[#allocation11 + $0x58] sm:$0xff] }
 0x35c   :  { %v911_v18 = vadd.f32 %v3720_v59, %v874_v11  ;;  %2343 = vmatmul.mubr.f32.vlgmr.msra.gmra.mrb[24].mxu0 %v3730_v8  ;;  %2387 = vmatmul.mubr.f32.vlgmr.msra.gmra.mrb[32].mxu1 %v3730_v8 }
 0x35d   :  { %2837 = vmatpush3.bf16.msra.mxu0 %v3484_v21  ;;  %2869 = vmatpush3.bf16.msra.mxu1 %v3486_v23  ;;  %v878_v10 = vpop.f32.mrb[22].mxu1 }
 0x35e   :  { %v3738_v19 = vmax.f32 %v911_v18, 0.0  ;;  %v879_v27 = vadd.f32 %v3633_v26, %v878_v10  ;;  %v880_v29 = vpop.f32.mrb[23].mxu1  ;;  %2839 = vmatprep.subr.bf16.mxu0 %v3497_v35  ;;  %2871 = vmatprep.subr.bf16.mxu1 %v3499_v36 }
 0x360   :  { %v912_v28 = vadd.f32 %v3720_v59, %v879_v27  ;;  %2345 = vmatprep.mubr.f32.mxu0 %v3738_v19  ;;  %2389 = vmatprep.mubr.f32.mxu1 %v3738_v19 }
 0x361   :  { %2841 = vmatpush3.bf16.msra.mxu0 %v3497_v35  ;;  %2873 = vmatpush3.bf16.msra.mxu1 %v3499_v36  ;;  %v883_v21 = vpop.f32.mrb[24].mxu1 }
 0x362   :  { %v920_v23 = vmax.f32 %v912_v28, 0.0  ;;  %v884_v33 = vadd.f32 %v883_v21, %v3640_v40  ;;  %v885_v26 = vpop.f32.mrb[25].mxu1  ;;  %2843 = vmatprep.subr.bf16.mxu0 %v3513_v49  ;;  %2875 = vmatprep.subr.bf16.mxu1 %v3515_v50 }
 0x364   :  { %v913_v39 = vadd.f32 %v3720_v59, %v884_v33  ;;  %2346 = vmatmul.mubr.f32.gmra.mrb[26].mxu0 %v920_v23  ;;  %2390 = vmatmul.mubr.f32.gmra.mrb[34].mxu1 %v920_v23 }
 0x365   :  { %2845 = vmatpush3.bf16.msra.mxu0 %v3513_v49  ;;  %2877 = vmatpush3.bf16.msra.mxu1 %v3515_v50  ;;  %v888_v35 = vpop.f32.mrb[26].mxu1 }
 0x366   :  { %v921_v25 = vmax.f32 %v913_v39, 0.0  ;;  %v889_v36 = vadd.f32 %v3638_v38, %v888_v35  ;;  %v890_v31 = vpop.f32.mrb[27].mxu1  ;;  %2847 = vmatprep.subr.bf16.mxu0 %v3529_v61  ;;  %2879 = vmatprep.subr.bf16.mxu1 %v3531_v62 }
 0x368   :  { %v914_v40 = vadd.f32 %v3720_v59, %v889_v36  ;;  %2348 = vmatprep.mubr.f32.mxu0 %v921_v25  ;;  %2392 = vmatprep.mubr.f32.mxu1 %v921_v25 }
 0x369   :  { %2849 = vmatpush3.bf16.msra.mxu0 %v3529_v61  ;;  %2881 = vmatpush3.bf16.msra.mxu1 %v3531_v62  ;;  %v893_v49 = vpop.f32.mrb[28].mxu1 }
 0x36a   :  { %v922_v43 = vmax.f32 %v914_v40, 0.0  ;;  %v894_v50 = vadd.f32 %v893_v49, %v3645_v48  ;;  %v895_v34 = vpop.f32.mrb[29].mxu1  ;;  %2851 = vmatprep.subr.bf16.mxu0 %v3547_v12  ;;  %2883 = vmatprep.subr.bf16.mxu1 %v3549_v14 }
 0x36c   :  { %v915_v38 = vadd.f32 %v3720_v59, %v894_v50  ;;  %2349 = vmatmul.mubr.f32.gmra.mrb[28].mxu0 %v922_v43  ;;  %2393 = vmatmul.mubr.f32.gmra.mrb[36].mxu1 %v922_v43 }
 0x36d   :  { %2853 = vmatpush3.bf16.msra.mxu0 %v3547_v12  ;;  %2885 = vmatpush3.bf16.msra.mxu1 %v3549_v14  ;;  %v898_v61 = vpop.f32.mrb[30].mxu1  ;;  %v1466_v14 = vld [vmem:[#allocation11] sm:$0xff] }
 0x36e   :  { %v923_v6 = vmax.f32 %v915_v38, 0.0  ;;  %v899_v62 = vadd.f32 %v3643_v37, %v898_v61  ;;  %v900_v60 = vpop.f32.mrb[31].mxu1  ;;  %2855 = vmatprep.subr.bf16.mxu0 %v3557_v22  ;;  %2887 = vmatprep.subr.bf16.mxu1 %v3559_v24  ;;  %v1471_v37 = vld [vmem:[#allocation11 + $0x28] sm:$0xff] }
 0x370   :  { %v916_v48 = vadd.f32 %v3720_v59, %v899_v62  ;;  %2351 = vmatprep.mubr.f32.mxu0 %v923_v6  ;;  %2395 = vmatprep.mubr.f32.mxu1 %v923_v6 }
 0x371   :  { %2857 = vmatpush3.bf16.msra.mxu0 %v3557_v22  ;;  %2889 = vmatpush3.bf16.msra.mxu1 %v3559_v24  ;;  %v1467_v22 = vld [vmem:[#allocation11 + $0x8] sm:$0xff]  ;;  %v1468_v24 = vld [vmem:[#allocation11 + $0x10] sm:$0xff] }
 0x372   :  { %v924_v12 = vmax.f32 %v916_v48, 0.0  ;;  %2859 = vmatprep.subr.bf16.mxu0 %v3567_v30  ;;  %2891 = vmatprep.subr.bf16.mxu1 %v3569_v32 }
 0x374   :  { %2352 = vmatmul.mubr.f32.gmra.mrb[30].mxu0 %v924_v12  ;;  %2396 = vmatmul.mubr.f32.gmra.mrb[38].mxu1 %v924_v12 }
 0x375   :  { %2861 = vmatpush3.bf16.msra.mxu0 %v3567_v30  ;;  %2893 = vmatpush3.bf16.msra.mxu1 %v3569_v32  ;;  %v2934_v30 = vpack.c.bf16 %v1467_v22, %v1466_v14  ;;  %v1469_v32 = vld [vmem:[#allocation11 + $0x18] sm:$0xff] }
 0x376   :  { %2430 = vmatprep.mubr.f32.mxu0 %v3724_v2  ;;  %2474 = vmatprep.mubr.f32.mxu1 %v3724_v2  ;;  %v2946_v2 = vpack.c.bf16 %v1473_v9, %v1472_v1 }
 0x377   :  { %2863 = vmatprep.subr.bf16.mxu0 %v3575_v41  ;;  %2895 = vmatprep.subr.bf16.mxu1 %v3577_v42 }
 0x379   :  { %2865 = vmatpush3.bf16.msra.mxu0 %v3575_v41  ;;  %2897 = vmatpush3.bf16.msra.mxu1 %v3577_v42  ;;  %v2938_v41 = vpack.c.bf16 %v1469_v32, %v1468_v24  ;;  %v1470_v42 = vld [vmem:[#allocation11 + $0x20] sm:$0xff] }
 0x37a   :  { %2898 = vmatprep.subr.bf16.mxu0 %v3256_v15  ;;  %2935 = vmatprep.subr.bf16.mxu1 %v2934_v30  ;;  %v2942_v0 = vpack.c.bf16 %v1471_v37, %v1470_v42 }
 0x37c   :  { %2431 = vmatmul.mubr.f32.vlgmr.msra.gmra.mrb[32].mxu0 %v3730_v8  ;;  %2475 = vmatmul.mubr.f32.vlgmr.msra.gmra.mrb[40].mxu1 %v3730_v8  ;;  %v2954_v8 = vpack.c.bf16 %v1477_v7, %v1476_v16  ;;  %v1601_v16 = vld [vmem:[#allocation13 + $0x38] sm:$0xff] }
 0x37d   :  { %2433 = vmatprep.mubr.f32.mxu0 %v3738_v19  ;;  %2477 = vmatprep.mubr.f32.mxu1 %v3738_v19 }
 0x37e   :  { %2937 = vmatpush3.bf16.msra.mxu1 %v2934_v30 }
 0x37f   :  { %2939 = vmatprep.subr.bf16.mxu1 %v2938_v41 }
 0x380   :  { %2434 = vmatmul.mubr.f32.gmra.mrb[34].mxu0 %v920_v23  ;;  %2478 = vmatmul.mubr.f32.gmra.mrb[42].mxu1 %v920_v23 }
 0x381   :  { %2436 = vmatprep.mubr.f32.mxu0 %v921_v25  ;;  %2480 = vmatprep.mubr.f32.mxu1 %v921_v25 }
 0x382   :  { %2941 = vmatpush3.bf16.msra.mxu1 %v2938_v41 }
 0x383   :  { %2943 = vmatprep.subr.bf16.mxu1 %v2942_v0 }
 0x384   :  { %2437 = vmatmul.mubr.f32.gmra.mrb[36].mxu0 %v922_v43  ;;  %2481 = vmatmul.mubr.f32.gmra.mrb[44].mxu1 %v922_v43 }
 0x385   :  { %2439 = vmatprep.mubr.f32.mxu0 %v923_v6  ;;  %2483 = vmatprep.mubr.f32.mxu1 %v923_v6 }
 0x386   :  { %2945 = vmatpush3.bf16.msra.mxu1 %v2942_v0 }
 0x387   :  { %2947 = vmatprep.subr.bf16.mxu1 %v2946_v2 }
 0x388   :  { %2440 = vmatmul.mubr.f32.gmra.mrb[38].mxu0 %v924_v12  ;;  %2484 = vmatmul.mubr.f32.gmra.mrb[46].mxu1 %v924_v12 }
 0x389   :  { %1808 = vmatprep.mubr.msk.f32.mxu0 %vm772_vm0, %v3617_v20  ;;  %v2950_v20 = vpack.c.bf16 %v1475_v5, %v1474_v4 }
 0x38a   :  { %2949 = vmatpush3.bf16.msra.mxu1 %v2946_v2 }
 0x38b   :  { %2951 = vmatprep.subr.bf16.mxu1 %v2950_v20 }
 0x38e   :  { %2953 = vmatpush3.bf16.msra.mxu1 %v2950_v20 }
 0x38f   :  { %2955 = vmatprep.subr.bf16.mxu1 %v2954_v8 }
 0x392   :  { %2957 = vmatpush3.bf16.msra.mxu1 %v2954_v8  ;;  %v1602_v8 = vld [vmem:[#allocation13 + $0x40] sm:$0xff] }
 0x42f   :  { %v2344_v11 = vpop.f32.mrb[24].mxu0  ;;  %v2388_v17 = vpop.f32.mrb[32].mxu1 }
 0x430   :  { %v991_v18 = vpop.f32.mrb[25].mxu0  ;;  %v1096_v10 = vpop.f32.mrb[33].mxu1 }
 0x431   :  { %v2899_v19 = vpack.c.bf16 %v2344_v11, %v991_v18  ;;  %v2911_v27 = vpack.c.bf16 %v2388_v17, %v1096_v10  ;;  %v1603_v11 = vld [vmem:[#allocation13 + $0x48] sm:$0xff]  ;;  %v1604_v18 = vld [vmem:[#allocation13 + $0x50] sm:$0xff]  ;;  %v1605_v10 = vld [vmem:[#allocation13 + $0x58] sm:$0xff] }
 0x432   :  { %v2982_v17 = vpack.c.bf16 %v1603_v11, %v1602_v8 }
 0x433   :  { %2900 = vmatpush1.bf16.msra.mxu0 %v2899_v19  ;;  %v3838_v19 = vpack.c.bf16 %v1605_v10, %v1604_v18 }
 0x434   :  { %2901 = vmatprep.subr.bf16.mxu0 %v3256_v15 }
 0x437   :  { %v2347_v29 = vpop.f32.mrb[26].mxu0  ;;  %v2391_v28 = vpop.f32.mrb[34].mxu1 }
 0x438   :  { %v1001_v21 = vpop.f32.mrb[27].mxu0  ;;  %v1106_v23 = vpop.f32.mrb[35].mxu1 }
 0x439   :  { %v2902_v33 = vpack.c.bf16 %v2347_v29, %v1001_v21  ;;  %v2914_v26 = vpack.c.bf16 %v2391_v28, %v1106_v23  ;;  %v1607_v29 = vld [vmem:[#allocation13 + $0x68] sm:$0xff] }
 0x43b   :  { %2903 = vmatpush1.bf16.msra.mxu0 %v2902_v33 }
 0x43c   :  { %2904 = vmatprep.subr.bf16.mxu0 %v3256_v15 }
 0x43f   :  { %v2350_v39 = vpop.f32.mrb[28].mxu0  ;;  %v2394_v35 = vpop.f32.mrb[36].mxu1 }
 0x440   :  { %v1011_v25 = vpop.f32.mrb[29].mxu0  ;;  %v1116_v36 = vpop.f32.mrb[37].mxu1 }
 0x441   :  { %v2905_v31 = vpack.c.bf16 %v2350_v39, %v1011_v25  ;;  %v2917_v40 = vpack.c.bf16 %v2394_v35, %v1116_v36 }
 0x443   :  { %2906 = vmatpush1.bf16.msra.mxu0 %v2905_v31 }
 0x444   :  { %2907 = vmatprep.subr.bf16.mxu0 %v3256_v15 }
 0x447   :  { %v2353_v49 = vpop.f32.mrb[30].mxu0  ;;  %v2397_v43 = vpop.f32.mrb[38].mxu1 }
 0x448   :  { %v1021_v50 = vpop.f32.mrb[31].mxu0  ;;  %v1126_v34 = vpop.f32.mrb[39].mxu1 }
 0x449   :  { %v2908_v38 = vpack.c.bf16 %v2353_v49, %v1021_v50  ;;  %v2920_v61 = vpack.c.bf16 %v2397_v43, %v1126_v34 }
 0x44b   :  { %2909 = vmatpush1.bf16.msra.mxu0 %v2908_v38 }
 0x44c   :  { %2910 = vmatprep.subr.bf16.mxu0 %v3256_v15 }
 0x44f   :  { %v2432_v6 = vpop.f32.mrb[32].mxu0  ;;  %v3793_v62 = vpop.f32.mrb[40].mxu1  ;;  %2912 = vmatpush1.bf16.msra.mxu0 %v2911_v27  ;;  %v1606_v27 = vld [vmem:[#allocation13 + $0x60] sm:$0xff] }
 0x450   :  { %v1201_v60 = vpop.f32.mrb[33].mxu0  ;;  %v3795_v48 = vpop.f32.mrb[41].mxu1  ;;  %2913 = vmatprep.subr.bf16.mxu0 %v3256_v15  ;;  %v3841_v28 = vpack.c.bf16 %v1607_v29, %v1606_v27 }
 0x451   :  { %v2923_v12 = vpack.c.bf16 %v2432_v6, %v1201_v60 }
 0x453   :  { %v2435_v14 = vpop.f32.mrb[34].mxu0  ;;  %v3798_v22 = vpop.f32.mrb[42].mxu1  ;;  %2915 = vmatpush1.bf16.msra.mxu0 %v2914_v26 }
 0x454   :  { %v1211_v24 = vpop.f32.mrb[35].mxu0  ;;  %v3800_v30 = vpop.f32.mrb[43].mxu1  ;;  %2916 = vmatprep.subr.bf16.mxu0 %v3256_v15 }
 0x455   :  { %v2926_v32 = vpack.c.bf16 %v2435_v14, %v1211_v24 }
 0x457   :  { %v2438_v41 = vpop.f32.mrb[36].mxu0  ;;  %v3803_v42 = vpop.f32.mrb[44].mxu1  ;;  %2918 = vmatpush1.bf16.msra.mxu0 %v2917_v40 }
 0x458   :  { %v1221_v37 = vpop.f32.mrb[37].mxu0  ;;  %v3805_v0 = vpop.f32.mrb[45].mxu1  ;;  %2919 = vmatprep.subr.bf16.mxu0 %v3256_v15 }
 0x459   :  { %v2929_v1 = vpack.c.bf16 %v2438_v41, %v1221_v37 }
 0x45b   :  { %v2441_v9 = vpop.f32.mrb[38].mxu0  ;;  %v3808_v2 = vpop.f32.mrb[46].mxu1  ;;  %2921 = vmatpush1.bf16.msra.mxu0 %v2920_v61 }
 0x45c   :  { %v1231_v4 = vpop.f32.mrb[39].mxu0  ;;  %v3810_v5 = vpop.f32.mrb[47].mxu1  ;;  %2922 = vmatprep.subr.bf16.mxu0 %v3256_v15 }
 0x45d   :  { %v2932_v20 = vpack.c.bf16 %v2441_v9, %v1231_v4 }
 0x45f   :  { %2924 = vmatpush1.bf16.msra.mxu0 %v2923_v12 }
 0x460   :  { %2925 = vmatprep.subr.bf16.mxu0 %v3256_v15 }
 0x463   :  { %2927 = vmatpush1.bf16.msra.mxu0 %v2926_v32 }
 0x464   :  { %2928 = vmatprep.subr.bf16.mxu0 %v3256_v15 }
 0x467   :  { %2930 = vmatpush1.bf16.msra.mxu0 %v2929_v1 }
 0x468   :  { %2931 = vmatprep.subr.bf16.mxu0 %v3256_v15  ;;  %v1478_v15 = vld [vmem:[#allocation11 + $0x60] sm:$0xff] }
 0x46b   :  { %2933 = vmatpush1.bf16.msra.mxu0 %v2932_v20 }
 0x46e   :  { %1410 = vmatmul.mubr.f32.vlgmr.msra.gmra.mrb[40].mxu0 %v3648_v44  ;;  %v1479_v44 = vld [vmem:[#allocation11 + $0x68] sm:$0xff] }
 0x46f   :  { %1809 = vmatprep.mubr.msk.f32.mxu0 %vm772_vm0, %v3650_v45  ;;  %v2958_v45 = vpack.c.bf16 %v1479_v44, %v1478_v15 }
 0x471   :  { %2959 = vmatprep.subr.bf16.mxu1 %v2958_v45 }
 0x472   :  { %1415 = vmatmul.mubr.f32.gmra.mrb[42].mxu0 %v3656_v13  ;;  %2961 = vmatpush3.bf16.msra.mxu1 %v2958_v45  ;;  %v1480_v13 = vld [vmem:[#allocation11 + $0x70] sm:$0xff] }
 0x473   :  { %1810 = vmatprep.mubr.msk.f32.mxu0 %vm772_vm0, %v3659_v46  ;;  %v1481_v46 = vld [vmem:[#allocation11 + $0x78] sm:$0xff] }
 0x476   :  { %1420 = vmatmul.mubr.f32.gmra.mrb[44].mxu0 %v3665_v51  ;;  %v2962_v51 = vpack.c.bf16 %v1481_v46, %v1480_v13 }
 0x477   :  { %1811 = vmatprep.mubr.msk.f32.mxu0 %vm772_vm0, %v3668_v52  ;;  %v1594_v52 = vld [vmem:[#allocation13] sm:$0xff] }
 0x478   :  { %2963 = vmatprep.subr.bf16.mxu1 %v2962_v51 }
 0x479   :  { %2965 = vmatpush3.bf16.msra.mxu1 %v2962_v51 }
 0x47a   :  { %1425 = vmatmul.mubr.f32.gmra.mrb[46].mxu0 %v3674_v47  ;;  %v1595_v47 = vld [vmem:[#allocation13 + $0x8] sm:$0xff] }
 0x47b   :  { %1812 = vmatprep.mubr.msk.f32.mxu0 %vm772_vm0, %v3677_v54  ;;  %v1596_v54 = vld [vmem:[#allocation13 + $0x10] sm:$0xff] }
 0x47e   :  { %1430 = vmatmul.mubr.f32.gmra.mrb[48].mxu0 %v3683_v53  ;;  %v2966_v53 = vpack.c.bf16 %v1595_v47, %v1594_v52  ;;  %v1609_v52 = vld [vmem:[#allocation13 + $0x78] sm:$0xff] }
 0x47f   :  { %1813 = vmatprep.mubr.msk.f32.mxu0 %vm772_vm0, %v3686_v55  ;;  %v1597_v55 = vld [vmem:[#allocation13 + $0x18] sm:$0xff] }
 0x480   :  { %2967 = vmatprep.subr.bf16.mxu0 %v2966_v53  ;;  %2998 = vmatprep.subr.bf16.mxu1 %v2966_v53 }
 0x481   :  { %2969 = vmatpush3.bf16.msra.mxu0 %v2966_v53 }
 0x482   :  { %1435 = vmatmul.mubr.f32.gmra.mrb[50].mxu0 %v3692_v58  ;;  %v2970_v58 = vpack.c.bf16 %v1597_v55, %v1596_v54 }
 0x483   :  { %1814 = vmatprep.mubr.msk.f32.mxu0 %vm772_vm0, %v3695_v56  ;;  %v1598_v56 = vld [vmem:[#allocation13 + $0x20] sm:$0xff] }
 0x484   :  { %2971 = vmatprep.subr.bf16.mxu0 %v2970_v58 }
 0x485   :  { %2973 = vmatpush3.bf16.msra.mxu0 %v2970_v58 }
 0x486   :  { %1440 = vmatmul.mubr.f32.gmra.mrb[52].mxu0 %v3701_v63  ;;  %v1599_v63 = vld [vmem:[#allocation13 + $0x28] sm:$0xff] }
 0x487   :  { %1815 = vmatprep.mubr.msk.f32.mxu0 %vm772_vm0, %v3704_v57  ;;  %v2974_v57 = vpack.c.bf16 %v1599_v63, %v1598_v56 }
 0x489   :  { %2975 = vmatprep.subr.bf16.mxu0 %v2974_v57 }
 0x48a   :  { %1445 = vmatmul.mubr.f32.gmra.mrb[54].mxu0 %v3710_v3  ;;  %v1600_v3 = vld [vmem:[#allocation13 + $0x30] sm:$0xff] }
 0x48b   :  { %v2978_v7 = vpack.c.bf16 %v1601_v16, %v1600_v3  ;;  %2977 = vmatpush3.bf16.msra.mxu0 %v2974_v57 }
 0x48d   :  { %2979 = vmatprep.subr.bf16.mxu0 %v2978_v7 }
 0x48f   :  { %2981 = vmatpush3.bf16.msra.mxu0 %v2978_v7 }
 0x490   :  { %2983 = vmatprep.subr.bf16.mxu0 %v2982_v17 }
 0x493   :  { %2985 = vmatpush3.bf16.msra.mxu0 %v2982_v17 }
 0x494   :  { %2987 = vmatprep.subr.bf16.mxu0 %v3838_v19 }
 0x497   :  { %2989 = vmatpush3.bf16.msra.mxu0 %v3838_v19 }
 0x498   :  { %2991 = vmatprep.subr.bf16.mxu0 %v3841_v28 }
 0x49b   :  { %2993 = vmatpush3.bf16.msra.mxu0 %v3841_v28 }
 0x541   :  { %v1411_v21 = vpop.f32.mrb[40].mxu0 }
 0x542   :  { %v1412_v23 = vadd.f32 %v1411_v21, %v3795_v48  ;;  %v1413_v33 = vpop.f32.mrb[41].mxu0 }
 0x544   :  { %v1450_v26 = vadd.f32 %v3720_v59, %v1412_v23 }
 0x545   :  { %v1416_v39 = vpop.f32.mrb[42].mxu0 }
 0x546   :  { %v1458_v35 = vmax.f32 %v1450_v26, 0.0  ;;  %v1417_v25 = vadd.f32 %v3793_v62, %v1416_v39  ;;  %v1418_v36 = vpop.f32.mrb[43].mxu0 }
 0x548   :  { %v1451_v31 = vadd.f32 %v3720_v59, %v1417_v25  ;;  %2518 = vmatprep.mubr.f32.mxu1 %v1458_v35 }
 0x549   :  { %v1421_v40 = vpop.f32.mrb[44].mxu0 }
 0x54a   :  { %v1459_v49 = vmax.f32 %v1451_v31, 0.0  ;;  %v1422_v43 = vadd.f32 %v1421_v40, %v3800_v30  ;;  %v1423_v50 = vpop.f32.mrb[45].mxu0 }
 0x54c   :  { %v1452_v34 = vadd.f32 %v3720_v59, %v1422_v43  ;;  %2519 = vmatmul.mubr.f32.vlgmr.msra.gmra.mrb[48].mxu1 %v1459_v49 }
 0x54d   :  { %v1426_v38 = vpop.f32.mrb[46].mxu0  ;;  %3006 = vmatpush3.bf16.msra.mxu1 %v2966_v53 }
 0x54e   :  { %v1460_v61 = vmax.f32 %v1452_v34, 0.0  ;;  %v1427_v6 = vadd.f32 %v3798_v22, %v1426_v38  ;;  %v1428_v60 = vpop.f32.mrb[47].mxu0  ;;  %2999 = vmatprep.subr.bf16.mxu1 %v2970_v58 }
 0x550   :  { %v1453_v62 = vadd.f32 %v3720_v59, %v1427_v6  ;;  %2521 = vmatprep.mubr.f32.mxu1 %v1460_v61 }
 0x551   :  { %v1431_v48 = vpop.f32.mrb[48].mxu0  ;;  %3007 = vmatpush3.bf16.msra.mxu1 %v2970_v58 }
 0x552   :  { %v1461_v12 = vmax.f32 %v1453_v62, 0.0  ;;  %v1432_v14 = vadd.f32 %v1431_v48, %v3805_v0  ;;  %v1433_v24 = vpop.f32.mrb[49].mxu0  ;;  %3000 = vmatprep.subr.bf16.mxu1 %v2974_v57 }
 0x554   :  { %v1454_v30 = vadd.f32 %v3720_v59, %v1432_v14  ;;  %2522 = vmatmul.mubr.f32.gmra.mrb[50].mxu1 %v1461_v12 }
 0x555   :  { %v1436_v32 = vpop.f32.mrb[50].mxu0  ;;  %3008 = vmatpush3.bf16.msra.mxu1 %v2974_v57 }
 0x556   :  { %v1462_v41 = vmax.f32 %v1454_v30, 0.0  ;;  %v1437_v22 = vadd.f32 %v3803_v42, %v1436_v32  ;;  %v1438_v37 = vpop.f32.mrb[51].mxu0  ;;  %3001 = vmatprep.subr.bf16.mxu1 %v2978_v7 }
 0x558   :  { %v1455_v1 = vadd.f32 %v3720_v59, %v1437_v22  ;;  %2524 = vmatprep.mubr.f32.mxu1 %v1462_v41 }
 0x559   :  { %v1441_v9 = vpop.f32.mrb[52].mxu0  ;;  %3009 = vmatpush3.bf16.msra.mxu1 %v2978_v7 }
 0x55a   :  { %v1463_v4 = vmax.f32 %v1455_v1, 0.0  ;;  %v1442_v0 = vadd.f32 %v1441_v9, %v3810_v5  ;;  %v1443_v20 = vpop.f32.mrb[53].mxu0  ;;  %3002 = vmatprep.subr.bf16.mxu1 %v2982_v17  ;;  %v1608_v5 = vld [vmem:[#allocation13 + $0x70] sm:$0xff] }
 0x55b   :  { %v2994_v47 = vpack.c.bf16 %v1609_v52, %v1608_v5 }
 0x55c   :  { %v1456_v15 = vadd.f32 %v3720_v59, %v1442_v0  ;;  %2525 = vmatmul.mubr.f32.gmra.mrb[52].mxu1 %v1463_v4 }
 0x55d   :  { %v1446_v44 = vpop.f32.mrb[54].mxu0  ;;  %3010 = vmatpush3.bf16.msra.mxu1 %v2982_v17  ;;  %2995 = vmatprep.subr.bf16.mxu0 %v2994_v47 }
 0x55e   :  { %v1464_v45 = vmax.f32 %v1456_v15, 0.0  ;;  %v1447_v42 = vadd.f32 %v3808_v2, %v1446_v44  ;;  %v1448_v13 = vpop.f32.mrb[55].mxu0  ;;  %3003 = vmatprep.subr.bf16.mxu1 %v3838_v19  ;;  %2997 = vmatpush3.bf16.msra.mxu0 %v2994_v47 }
 0x560   :  { %v1457_v46 = vadd.f32 %v3720_v59, %v1447_v42  ;;  %2527 = vmatprep.mubr.f32.mxu1 %v1464_v45  ;;  %v1816_v59 = vld [vmem:[%s3895_s8] ss:$0 sm:$0xff] }
 0x561   :  { %3011 = vmatpush3.bf16.msra.mxu1 %v3838_v19  ;;  %v1817_v19 = vld [vmem:[%s3897_s10] ss:$0 sm:$0xff]  ;;  %s3257_s10 = smov [#allocation14]  }
 0x562   :  { %v1465_v51 = vmax.f32 %v1457_v46, 0.0  ;;  %3004 = vmatprep.subr.bf16.mxu1 %v3841_v28  ;;  %s1783_s28 = sshll.u32 %s3257_s10, 4  ;;  %s1784_s28 = int_to_ptr.vmem [resolvable:$true] %s1783_s28 }
 0x563   :  { %s3213_s29 = scalar_lea.vmem %s1784_s28, 1024  ;;  %p3218_p1 = scmp.lt.s32.totalorder %s1784_s28, %s1784_s28 }
 0x564   :  { %2528 = vmatmul.mubr.f32.gmra.mrb[54].mxu1 %v1465_v51  ;;  %p3214_p0 = scmp.ne.s32.totalorder %s1784_s28, %s3213_s29  ;;  %p3219_p2 = scmp.lt.s32.totalorder %s3213_s29, %s3213_s29 }
 0x565   :  { %3012 = vmatpush3.bf16.msra.mxu1 %v3841_v28 }
 0x566   :  { %3005 = vmatprep.subr.bf16.mxu1 %v2994_v47  ;;  %p3220_p3 = por %p3219_p2, %p3218_p1 }
 0x568   :  { %p3221_p4 = pnand %p3220_p3, %p3214_p0 }
 0x569   :  { %3013 = vmatpush3.bf16.msra.mxu1 %v2994_v47 }
 0x61f   :  { %v2520_v2 = vpop.f32.mrb[48].mxu1 }
 0x620   :  { %v1555_v54 = vpop.f32.mrb[49].mxu1  ;;  %v1561_v55 = vadd.f32 %v2520_v2, %v1816_v59 }
 0x621   :  { %v1556_v53 = vadd.f32 %v1816_v59, %v1555_v54 }
 0x623   :  { %2562 = vmatprep.mubr.f32.mxu0 %v1556_v53 }
 0x624   :  { %2563 = vmatmul.mubr.f32.vlgmr.msra.gmra.mrb[56].mxu0 %v1561_v55 }
 0x627   :  { %v2523_v58 = vpop.f32.mrb[50].mxu1 }
 0x628   :  { %v1565_v56 = vpop.f32.mrb[51].mxu1  ;;  %v1571_v57 = vadd.f32 %v2523_v58, %v1816_v59 }
 0x629   :  { %v1566_v63 = vadd.f32 %v1816_v59, %v1565_v56 }
 0x62b   :  { %2565 = vmatprep.mubr.f32.mxu0 %v1566_v63 }
 0x62c   :  { %2566 = vmatmul.mubr.f32.gmra.mrb[58].mxu0 %v1571_v57 }
 0x62f   :  { %v2526_v3 = vpop.f32.mrb[52].mxu1 }
 0x630   :  { %v1575_v16 = vpop.f32.mrb[53].mxu1  ;;  %v1581_v8 = vadd.f32 %v2526_v3, %v1816_v59 }
 0x631   :  { %v1576_v7 = vadd.f32 %v1816_v59, %v1575_v16 }
 0x633   :  { %2568 = vmatprep.mubr.f32.mxu1 %v1576_v7 }
 0x634   :  { %2569 = vmatmul.mubr.f32.vlgmr.msra.gmra.mrb[56].mxu1 %v1581_v8 }
 0x637   :  { %v2529_v11 = vpop.f32.mrb[54].mxu1 }
 0x638   :  { %v1585_v17 = vpop.f32.mrb[55].mxu1  ;;  %v1591_v10 = vadd.f32 %v2529_v11, %v1816_v59 }
 0x639   :  { %v1586_v18 = vadd.f32 %v1816_v59, %v1585_v17 }
 0x63b   :  { %2571 = vmatprep.mubr.f32.mxu1 %v1586_v18 }
 0x63c   :  { %2572 = vmatmul.mubr.f32.gmra.mrb[58].mxu1 %v1591_v10 }
 0x6f7   :  { %v2564_v27 = vpop.f32.mrb[56].mxu0 }
 0x6f8   :  { %v1689_v29 = vadd.f32 %v2564_v27, %v1817_v19  ;;  %v1683_v28 = vpop.f32.mrb[57].mxu0 }
 0x6f9   :  { %v1684_v21 = vadd.f32 %v1817_v19, %v1683_v28 }
 0x6fa   :  { %v1819_v23 = vmul.f32 -1.442695, %v1689_v29 }
 0x6fb   :  { %v1818_v33 = vmul.f32 -1.442695, %v1684_v21 }
 0x6fc   :  { %3027 = vpow2.f32 %v1819_v23 }
 0x6fd   :  { %3029 = vpow2.f32 %v1818_v33 }
 0x6ff   :  { %v2567_v26 = vpop.f32.mrb[58].mxu0 }
 0x700   :  { %v1699_v39 = vadd.f32 %v2567_v26, %v1817_v19  ;;  %v1693_v35 = vpop.f32.mrb[59].mxu0 }
 0x701   :  { %v1694_v25 = vadd.f32 %v1817_v19, %v1693_v35 }
 0x702   :  { %v1821_v36 = vmul.f32 -1.442695, %v1699_v39 }
 0x703   :  { %v1820_v31 = vmul.f32 -1.442695, %v1694_v25 }
 0x704   :  { %3031 = vpow2.f32 %v1821_v36 }
 0x705   :  { %3033 = vpow2.f32 %v1820_v31 }
 0x706   :  { %v3028_v40 = vpop.eup %3027 }
 0x707   :  { %v3030_v49 = vpop.eup %3029  ;;  %v1747_v43 = vadd.f32 1.0, %v3028_v40  ;;  %v2570_v50 = vpop.f32.mrb[56].mxu1 }
 0x708   :  { %v1746_v34 = vadd.f32 1.0, %v3030_v49  ;;  %v1709_v38 = vadd.f32 %v2570_v50, %v1817_v19  ;;  %v1703_v61 = vpop.f32.mrb[57].mxu1 }
 0x709   :  { %3035 = vrcp.f32 %v1747_v43  ;;  %v1704_v6 = vadd.f32 %v1817_v19, %v1703_v61 }
 0x70a   :  { %3037 = vrcp.f32 %v1746_v34  ;;  %v1823_v60 = vmul.f32 -1.442695, %v1709_v38 }
 0x70b   :  { %v1822_v62 = vmul.f32 -1.442695, %v1704_v6 }
 0x70c   :  { %3039 = vpow2.f32 %v1823_v60 }
 0x70d   :  { %3041 = vpow2.f32 %v1822_v62 }
 0x70e   :  { %v3032_v48 = vpop.eup %3031 }
 0x70f   :  { %v3034_v12 = vpop.eup %3033  ;;  %v1749_v14 = vadd.f32 1.0, %v3032_v48  ;;  %v2573_v24 = vpop.f32.mrb[58].mxu1 }
 0x710   :  { %v1748_v30 = vadd.f32 1.0, %v3034_v12  ;;  %v1719_v32 = vadd.f32 %v2573_v24, %v1817_v19  ;;  %v1713_v41 = vpop.f32.mrb[59].mxu1 }
 0x711   :  { %3043 = vrcp.f32 %v1749_v14  ;;  %v1714_v22 = vadd.f32 %v1817_v19, %v1713_v41 }
 0x712   :  { %3045 = vrcp.f32 %v1748_v30  ;;  %v1825_v37 = vmul.f32 -1.442695, %v1719_v32 }
 0x713   :  { %v3036_v1 = vpop.eup %3035  ;;  %v1824_v9 = vmul.f32 -1.442695, %v1714_v22 }
 0x714   :  { %v3038_v4 = vpop.eup %3037  ;;  %1771 = vst [vmem:[#allocation14 + $0x8] sm:$0xff] %v3036_v1  ;;  %3047 = vpow2.f32 %v1825_v37 }
 0x715   :  { %1770 = vst [vmem:[#allocation14] sm:$0xff] %v3038_v4  ;;  %3049 = vpow2.f32 %v1824_v9 }
 0x716   :  { %v3040_v0 = vpop.eup %3039 }
 0x717   :  { %v3042_v20 = vpop.eup %3041  ;;  %v1751_v15 = vadd.f32 1.0, %v3040_v0 }
 0x718   :  { %v1750_v44 = vadd.f32 1.0, %v3042_v20 }
 0x719   :  { %3051 = vrcp.f32 %v1751_v15 }
 0x71a   :  { %3053 = vrcp.f32 %v1750_v44 }
 0x71b   :  { %v3044_v45 = vpop.eup %3043 }
 0x71c   :  { %v3046_v42 = vpop.eup %3045  ;;  %1773 = vst [vmem:[#allocation14 + $0x18] sm:$0xff] %v3044_v45 }
 0x71d   :  { %1772 = vst [vmem:[#allocation14 + $0x10] sm:$0xff] %v3046_v42 }
 0x71e   :  { %v3048_v13 = vpop.eup %3047 }
 0x71f   :  { %v3050_v46 = vpop.eup %3049  ;;  %v1753_v51 = vadd.f32 1.0, %v3048_v13 }
 0x720   :  { %v1752_v5 = vadd.f32 1.0, %v3050_v46 }
 0x721   :  { %3055 = vrcp.f32 %v1753_v51 }
 0x722   :  { %3057 = vrcp.f32 %v1752_v5 }
 0x723   :  { %v3052_v52 = vpop.eup %3051 }
 0x724   :  { %v3054_v47 = vpop.eup %3053  ;;  %1775 = vst [vmem:[#allocation14 + $0x28] sm:$0xff] %v3052_v52 }
 0x725   :  { %1774 = vst [vmem:[#allocation14 + $0x20] sm:$0xff] %v3054_v47 }
 0x72b   :  { %v3056_v59 = vpop.eup %3055 }
 0x72c   :  { %v3058_v2 = vpop.eup %3057  ;;  %1777 = vst [vmem:[#allocation14 + $0x38] sm:$0xff] %v3056_v59 }
 0x72d   :  { %1776 = vst [vmem:[#allocation14 + $0x30] sm:$0xff] %v3058_v2 }
 0x72e   :  { %3224 = shalt.err (!%p3221_p4)
}
 0x72f   :  { %s3225_s30 = scalar_lea.hbm %s3898_s11, 1024 }
 0x730   :  { %p3226_p5 = scmp.ne.s32.totalorder %s3898_s11, %s3225_s30  ;;  %p3229_p6 = scmp.lt.u32.totalorder %s3225_s30, %s3898_s11 }
 0x732   :  { %p3231_p7 = pnand %p3229_p6, %p3226_p5 }
 0x734   :  { %3234 = shalt.err (!%p3231_p7)
}
 0x735   :  { %1789 = dma.vmem_to_hbm [thread:$0]  %s1784_s28, 1024, %s3898_s11, [#allocation4], %s3250_s18, %s3250_s18, %s3251_s24  }
 0x736   :  { %3243 = dma.done.wait [#allocation4], 1024  }
 0x737   :  { %3244 = vsyncadd [#allocation4], 4294966272 }
 0x738   :  { %1793 = vsyncpa [#allocation3], 1 }
 0x739   :  { %1794 = vsyncpa [#allocation6], 1 }
 0x73a   :  { %1795 = vsyncpa [#allocation9], 1 }
 0x73b   :  { %1796 = vsyncpa [#allocation12], 1 }
 0x73c   :  { %1797 = vsyncpa [#allocation4], 1 }

</bundles_post_ra>
